<compile_context>
chip_gen: v6e
topology: v6e:2x2x1
jax: 0.10.0
libtpu: 0.0.40
codegen_flags: <defaults>
</compile_context>

<pallas_src>
import math

import jax
import jax.numpy as jnp
from jax.experimental import pallas as pl
from jax.experimental.pallas import tpu as pltpu


def tnet_kernel(x_ref, a1t_ref, cf_ref, a2_ref, a3_ref, cc_ref, out_ref, g_ref):
    # x_ref   : (Bt, C, N)   points on lanes (lane-dense big intermediate)
    # a1t_ref : (F, C)       folded conv1 weight (bn1 scale included)
    # cf_ref  : (2, F)       row 0 = folded conv1/bn1 bias, row 1 = fc1/bn2 bias
    # a2_ref  : (F, F)       folded fc1 weight (in, out)
    # a3_ref  : (F, C*C)     folded fc2 weight (in, out)
    # cc_ref  : (2, C*C)     row 0 = folded fc2/bn3 bias, row 1 = flattened eye(C)
    # out_ref : (1, Bt*C*C)  lane-dense flattened output block
    # g_ref   : (Bt, F)      VMEM scratch: per-example max-pooled features
    Bt, C, N = x_ref.shape
    Fch = a1t_ref.shape[0]
    CC = a3_ref.shape[1]

    # Hoisted lane-broadcast of the C conv1 weight columns (once per grid step).
    a1t = a1t_ref[...]                                             # (F, C)
    w = [jnp.broadcast_to(a1t[:, c:c + 1][None, :, :], (1, Fch, N))
         for c in range(C)]                                        # C x (1, F, N)

    # conv1 (1x1) as a broadcast-FMA over the tiny contraction dim C, one batch
    # element at a time, reduced over N immediately into the (Bt, F) scratch so
    # the full (Bt, F, N) tensor is never live in vregs.
    for b in range(Bt):                                            # static, unrolled
        xb = x_ref[b:b + 1]                                        # (1, C, N)
        s = w[0] * xb[:, 0:1, :]                                   # (1, F, N)
        for c in range(1, C):
            s = s + w[c] * xb[:, c:c + 1, :]
        g_ref[b:b + 1, :] = jnp.max(s, axis=-1)                    # (1, F)

    # Folded bn1 bias + relu (exactly commutes with the max over N).
    g = jnp.maximum(g_ref[...] + cf_ref[0:1, :], 0.0)              # (Bt, F)

    # fc1 + folded bn2 + relu : (Bt, F)
    f1 = jnp.dot(g, a2_ref[...], preferred_element_type=jnp.float32)
    f1 = jnp.maximum(f1 + cf_ref[1:2, :], 0.0)

    # fc2 + folded bn3 + relu, then + flattened identity : (Bt, C*C)
    f2 = jnp.dot(f1, a3_ref[...], preferred_element_type=jnp.float32)
    f2 = jnp.maximum(f2 + cc_ref[0:1, :], 0.0)
    res = (f2 + cc_ref[1:2, :]).astype(out_ref.dtype)              # (Bt, CC)

    # Lane-dense writeback: fill the (1, Bt*CC) output block row-major with
    # static slice stores; the HBM writeback is one contiguous DMA per step.
    for b in range(Bt):
        out_ref[:, b * CC:(b + 1) * CC] = res[b:b + 1, :]


def _pick_bt(batch, input_channel):
    """Batch-tile size: large enough to amortize the ~0.35us/grid-step overhead
    and give the fc matmuls M=bt rows, small enough to keep >= 2 parallel grid
    steps for v7x's two TensorCores, and a multiple that makes bt*C*C a
    multiple of 128 so the flattened output block is lane-dense."""
    cc = input_channel * input_channel
    m = 128 // math.gcd(cc, 128)          # bt % m == 0  =>  (bt*cc) % 128 == 0
    bt = min(max(batch, 1), 32)
    half = -(-batch // 2)                 # ceil(B/2): v7x two-TC split
    if half >= m:
        bt = min(bt, half)
    return -(-bt // m) * m                # round up to a multiple of m


def make_tnet_params(key, input_channel, feature_channel):
    """Deterministic synthetic parameters matching the nn.Module shapes."""
    C, F = input_channel, feature_channel
    ks = jax.random.split(key, 18)
    p = {}
    # conv1: Conv1d(C, F, 1) -> weight (F, C, 1) squeezed to (F, C), bias (F,)
    p["conv1_w"] = jax.random.normal(ks[0], (F, C), jnp.float32) * 0.1
    p["conv1_b"] = jax.random.normal(ks[1], (F,), jnp.float32) * 0.1
    # fc1: Linear(F, F)
    p["fc1_w"] = jax.random.normal(ks[2], (F, F), jnp.float32) * 0.1
    p["fc1_b"] = jax.random.normal(ks[3], (F,), jnp.float32) * 0.1
    # fc2: Linear(F, C*C)
    p["fc2_w"] = jax.random.normal(ks[4], (C * C, F), jnp.float32) * 0.1
    p["fc2_b"] = jax.random.normal(ks[5], (C * C,), jnp.float32) * 0.1

    def bn(kg, kb, km, kv, n):
        return dict(
            gamma=1.0 + 0.1 * jax.random.normal(kg, (n,), jnp.float32),
            beta=0.1 * jax.random.normal(kb, (n,), jnp.float32),
            mean=0.1 * jax.random.normal(km, (n,), jnp.float32),
            var=jnp.abs(jax.random.normal(kv, (n,), jnp.float32)) + 0.5,
        )

    p["bn1"] = bn(ks[6], ks[7], ks[8], ks[9], F)
    p["bn2"] = bn(ks[10], ks[11], ks[12], ks[13], F)
    p["bn3"] = bn(ks[14], ks[15], ks[16], ks[17], C * C)
    return p


def _fold_bn(weight, bias, bn, eps=1e-5):
    """Fold eval-mode BN into (W', c) s.t. bn(x @ W.T + b) = x @ W'.T + c.

    weight: (out, in) PyTorch convention.  Returns W': (out, in), c: (out,).
    """
    scale = bn["gamma"] / jnp.sqrt(bn["var"] + eps)            # (out,)
    shift = bn["beta"] - bn["mean"] * scale                    # (out,)
    return weight * scale[:, None], bias * scale + shift


def tnet_forward(x_ncl, params, input_channel, feature_channel, bt=None):
    """x_ncl: (B, C_in, N) float32 (PyTorch NCL layout) -> (B, C_in, C_in)."""
    C, F = input_channel, feature_channel
    B, Cx, N = x_ncl.shape
    assert Cx == C
    CC = C * C

    # Keep the native (B, C, N) layout: no HBM transpose pass.
    x = x_ncl.astype(jnp.float32)
    # NOTE: for large N, cast x / A1t to bf16 here (f32 accumulation in-kernel)
    # and add an N-tiling "arbitrary" reduction axis per the plan above.

    A1t, c1 = _fold_bn(params["conv1_w"], params["conv1_b"], params["bn1"])  # (F,C),(F,)
    A2f, c2 = _fold_bn(params["fc1_w"], params["fc1_b"], params["bn2"])      # (F,F),(F,)
    A3f, c3 = _fold_bn(params["fc2_w"], params["fc2_b"], params["bn3"])      # (CC,F),(CC,)
    A2 = A2f.T                                                 # (F_in, F_out)
    A3 = A3f.T                                                 # (F, C*C)

    cF = jnp.stack([c1, c2], axis=0)                           # (2, F)
    iden = jnp.eye(C, dtype=jnp.float32).reshape(CC)
    cC = jnp.stack([c3, iden], axis=0)                         # (2, C*C)

    if bt is None:
        bt = _pick_bt(B, C)
    num_blocks = pl.cdiv(B, bt)
    B_pad = num_blocks * bt
    if B_pad != B:
        # Padded tail rows are computed on zeros and discarded (harmless).
        x = jnp.pad(x, ((0, B_pad - B), (0, 0), (0, 0)))

    out_flat = pl.pallas_call(
        tnet_kernel,
        out_shape=jax.ShapeDtypeStruct((1, B_pad * CC), jnp.float32),
        grid_spec=pltpu.PrefetchScalarGridSpec(
            num_scalar_prefetch=0,
            grid=(num_blocks,),
            in_specs=[
                pl.BlockSpec((bt, C, N), lambda i: (i, 0, 0)),     # x
                pl.BlockSpec((F, C), lambda i: (0, 0)),            # A1t (resident)
                pl.BlockSpec((2, F), lambda i: (0, 0)),            # c1 / c2
                pl.BlockSpec((F, F), lambda i: (0, 0)),            # A2
                pl.BlockSpec((F, CC), lambda i: (0, 0)),           # A3
                pl.BlockSpec((2, CC), lambda i: (0, 0)),           # c3 / iden
            ],
            out_specs=pl.BlockSpec((1, bt * CC), lambda i: (0, i)),
            scratch_shapes=[pltpu.VMEM((bt, F), jnp.float32)],
        ),
        compiler_params=pltpu.CompilerParams(
            dimension_semantics=("parallel",)),
    )(x, A1t, cF, A2, A3, cC)

    return out_flat.reshape(B_pad, CC)[:B].reshape(B, C, C)


def tnet_reference(x_ncl, params, input_channel, feature_channel):
    """Pure-JAX reference mirroring the PyTorch forward (eval-mode BN)."""
    C = input_channel
    eps = 1e-5

    def bn(y, b):  # y: (..., n)
        return (y - b["mean"]) / jnp.sqrt(b["var"] + eps) * b["gamma"] + b["beta"]

    x = jnp.transpose(x_ncl, (0, 2, 1))                         # (B, N, C)
    h = x @ params["conv1_w"].T + params["conv1_b"]             # (B, N, F)
    h = jax.nn.relu(bn(h, params["bn1"]))
    g = jnp.max(h, axis=1)                                      # (B, F)
    f1 = jax.nn.relu(bn(g @ params["fc1_w"].T + params["fc1_b"], params["bn2"]))
    f2 = jax.nn.relu(bn(f1 @ params["fc2_w"].T + params["fc2_b"], params["bn3"]))
    out = f2 + jnp.eye(C, dtype=jnp.float32).reshape(1, C * C)
    return out.reshape(-1, C, C)


if __name__ == "__main__":
    # Small shapes, but B=16 so the batch grid has 2 "parallel" steps (bt=8)
    # and the flattened output block is exactly 128 lanes wide.
    B, C_IN, FEAT, N_PTS = 16, 4, 32, 128

    key = jax.random.PRNGKey(0)
    k_params, k_x = jax.random.split(key)
    params = make_tnet_params(k_params, C_IN, FEAT)
    x = jax.random.normal(k_x, (B, C_IN, N_PTS), jnp.float32)   # PyTorch NCL input

    out = tnet_forward(x, params, C_IN, FEAT)
    out = jax.block_until_ready(out)

    ref = tnet_reference(x, params, C_IN, FEAT)
    assert out.shape == (B, C_IN, C_IN)
    assert jnp.allclose(out, ref, atol=1e-4, rtol=1e-4), "mismatch vs reference"

    print("KERNEL_OK")
</pallas_src>

<mosaic_0001>
module attributes {stable_mosaic.version = 11 : i64} {
  func.func @tnet_kernel(%arg0: i32, %arg1: memref<8x4x128xf32, #tpu.memory_space<vmem>>, %arg2: memref<32x4xf32, #tpu.memory_space<vmem>>, %arg3: memref<2x32xf32, #tpu.memory_space<vmem>>, %arg4: memref<32x32xf32, #tpu.memory_space<vmem>>, %arg5: memref<32x16xf32, #tpu.memory_space<vmem>>, %arg6: memref<2x16xf32, #tpu.memory_space<vmem>>, %arg7: memref<1x128xf32, #tpu.memory_space<vmem>>, %arg8: memref<8x32xf32, #tpu.memory_space<vmem>>) attributes {dimension_semantics = [#tpu.dimension_semantics<parallel>], iteration_bounds = array<i64: 2>, scalar_prefetch = 0 : i64, scratch_operands = 1 : i64, tpu.core_type = #tpu.core_type<tc>, window_params = [{transform_indices = @transform_0, window_bounds = array<i64: 8, 4, 128>}, {pipeline_mode = #tpu.pipeline_mode<synchronous>, transform_indices = @transform_1, window_bounds = array<i64: 32, 4>}, {pipeline_mode = #tpu.pipeline_mode<synchronous>, transform_indices = @transform_2, window_bounds = array<i64: 2, 32>}, {pipeline_mode = #tpu.pipeline_mode<synchronous>, transform_indices = @transform_3, window_bounds = array<i64: 32, 32>}, {pipeline_mode = #tpu.pipeline_mode<synchronous>, transform_indices = @transform_4, window_bounds = array<i64: 32, 16>}, {pipeline_mode = #tpu.pipeline_mode<synchronous>, transform_indices = @transform_5, window_bounds = array<i64: 2, 16>}, {transform_indices = @transform_6, window_bounds = array<i64: 1, 128>}]} {
    %c0 = arith.constant 0 : index
    %c0_0 = arith.constant 0 : index
    %0 = vector.load %arg2[%c0, %c0_0] : memref<32x4xf32, #tpu.memory_space<vmem>>, vector<32x4xf32>
    %1 = vector.extract_strided_slice %0 {offsets = [0, 0], sizes = [32, 1], strides = [1, 1]} : vector<32x4xf32> to vector<32x1xf32>
    %2 = vector.shape_cast %1 : vector<32x1xf32> to vector<1x32x1xf32>
    %3 = vector.shape_cast %2 : vector<1x32x1xf32> to vector<1x32x1xf32>
    %4 = vector.broadcast %3 : vector<1x32x1xf32> to vector<1x32x128xf32>
    %5 = vector.extract_strided_slice %0 {offsets = [0, 1], sizes = [32, 1], strides = [1, 1]} : vector<32x4xf32> to vector<32x1xf32>
    %6 = vector.shape_cast %5 : vector<32x1xf32> to vector<1x32x1xf32>
    %7 = vector.shape_cast %6 : vector<1x32x1xf32> to vector<1x32x1xf32>
    %8 = vector.broadcast %7 : vector<1x32x1xf32> to vector<1x32x128xf32>
    %9 = vector.extract_strided_slice %0 {offsets = [0, 2], sizes = [32, 1], strides = [1, 1]} : vector<32x4xf32> to vector<32x1xf32>
    %10 = vector.shape_cast %9 : vector<32x1xf32> to vector<1x32x1xf32>
    %11 = vector.shape_cast %10 : vector<1x32x1xf32> to vector<1x32x1xf32>
    %12 = vector.broadcast %11 : vector<1x32x1xf32> to vector<1x32x128xf32>
    %13 = vector.extract_strided_slice %0 {offsets = [0, 3], sizes = [32, 1], strides = [1, 1]} : vector<32x4xf32> to vector<32x1xf32>
    %14 = vector.shape_cast %13 : vector<32x1xf32> to vector<1x32x1xf32>
    %15 = vector.shape_cast %14 : vector<1x32x1xf32> to vector<1x32x1xf32>
    %16 = vector.broadcast %15 : vector<1x32x1xf32> to vector<1x32x128xf32>
    %c0_1 = arith.constant 0 : index
    %c0_2 = arith.constant 0 : index
    %c0_3 = arith.constant 0 : index
    %17 = vector.load %arg1[%c0_1, %c0_2, %c0_3] : memref<8x4x128xf32, #tpu.memory_space<vmem>>, vector<1x4x128xf32>
    %18 = vector.extract_strided_slice %17 {offsets = [0, 0, 0], sizes = [1, 1, 128], strides = [1, 1, 1]} : vector<1x4x128xf32> to vector<1x1x128xf32>
    %19 = vector.broadcast %18 : vector<1x1x128xf32> to vector<1x32x128xf32>
    %20 = arith.mulf %4, %19 : vector<1x32x128xf32>
    %21 = vector.extract_strided_slice %17 {offsets = [0, 1, 0], sizes = [1, 1, 128], strides = [1, 1, 1]} : vector<1x4x128xf32> to vector<1x1x128xf32>
    %22 = vector.broadcast %21 : vector<1x1x128xf32> to vector<1x32x128xf32>
    %23 = arith.mulf %8, %22 : vector<1x32x128xf32>
    %24 = arith.addf %20, %23 : vector<1x32x128xf32>
    %25 = vector.extract_strided_slice %17 {offsets = [0, 2, 0], sizes = [1, 1, 128], strides = [1, 1, 1]} : vector<1x4x128xf32> to vector<1x1x128xf32>
    %26 = vector.broadcast %25 : vector<1x1x128xf32> to vector<1x32x128xf32>
    %27 = arith.mulf %12, %26 : vector<1x32x128xf32>
    %28 = arith.addf %24, %27 : vector<1x32x128xf32>
    %29 = vector.extract_strided_slice %17 {offsets = [0, 3, 0], sizes = [1, 1, 128], strides = [1, 1, 1]} : vector<1x4x128xf32> to vector<1x1x128xf32>
    %30 = vector.broadcast %29 : vector<1x1x128xf32> to vector<1x32x128xf32>
    %31 = arith.mulf %16, %30 : vector<1x32x128xf32>
    %32 = arith.addf %28, %31 : vector<1x32x128xf32>
    %cst = arith.constant dense<0xFF800000> : vector<1x32xf32>
    %33 = vector.multi_reduction <maximumf>, %32, %cst [2] : vector<1x32x128xf32> to vector<1x32xf32>
    %c0_4 = arith.constant 0 : index
    %c0_5 = arith.constant 0 : index
    %34 = vector.load %arg8[%c0_4, %c0_5] : memref<8x32xf32, #tpu.memory_space<vmem>>, vector<1x32xf32>
    tpu.vector_store %arg8[%c0_4, %c0_5], %33 {strides = array<i32>} : memref<8x32xf32, #tpu.memory_space<vmem>>, vector<1x32xf32>,
    %c1 = arith.constant 1 : index
    %c0_6 = arith.constant 0 : index
    %c0_7 = arith.constant 0 : index
    %35 = vector.load %arg1[%c1, %c0_6, %c0_7] : memref<8x4x128xf32, #tpu.memory_space<vmem>>, vector<1x4x128xf32>
    %36 = vector.extract_strided_slice %35 {offsets = [0, 0, 0], sizes = [1, 1, 128], strides = [1, 1, 1]} : vector<1x4x128xf32> to vector<1x1x128xf32>
    %37 = vector.broadcast %36 : vector<1x1x128xf32> to vector<1x32x128xf32>
    %38 = arith.mulf %4, %37 : vector<1x32x128xf32>
    %39 = vector.extract_strided_slice %35 {offsets = [0, 1, 0], sizes = [1, 1, 128], strides = [1, 1, 1]} : vector<1x4x128xf32> to vector<1x1x128xf32>
    %40 = vector.broadcast %39 : vector<1x1x128xf32> to vector<1x32x128xf32>
    %41 = arith.mulf %8, %40 : vector<1x32x128xf32>
    %42 = arith.addf %38, %41 : vector<1x32x128xf32>
    %43 = vector.extract_strided_slice %35 {offsets = [0, 2, 0], sizes = [1, 1, 128], strides = [1, 1, 1]} : vector<1x4x128xf32> to vector<1x1x128xf32>
    %44 = vector.broadcast %43 : vector<1x1x128xf32> to vector<1x32x128xf32>
    %45 = arith.mulf %12, %44 : vector<1x32x128xf32>
    %46 = arith.addf %42, %45 : vector<1x32x128xf32>
    %47 = vector.extract_strided_slice %35 {offsets = [0, 3, 0], sizes = [1, 1, 128], strides = [1, 1, 1]} : vector<1x4x128xf32> to vector<1x1x128xf32>
    %48 = vector.broadcast %47 : vector<1x1x128xf32> to vector<1x32x128xf32>
    %49 = arith.mulf %16, %48 : vector<1x32x128xf32>
    %50 = arith.addf %46, %49 : vector<1x32x128xf32>
    %cst_8 = arith.constant dense<0xFF800000> : vector<1x32xf32>
    %51 = vector.multi_reduction <maximumf>, %50, %cst_8 [2] : vector<1x32x128xf32> to vector<1x32xf32>
    %c1_9 = arith.constant 1 : index
    %c0_10 = arith.constant 0 : index
    %52 = vector.load %arg8[%c1_9, %c0_10] : memref<8x32xf32, #tpu.memory_space<vmem>>, vector<1x32xf32>
    tpu.vector_store %arg8[%c1_9, %c0_10], %51 {strides = array<i32>} : memref<8x32xf32, #tpu.memory_space<vmem>>, vector<1x32xf32>,
    %c2 = arith.constant 2 : index
    %c0_11 = arith.constant 0 : index
    %c0_12 = arith.constant 0 : index
    %53 = vector.load %arg1[%c2, %c0_11, %c0_12] : memref<8x4x128xf32, #tpu.memory_space<vmem>>, vector<1x4x128xf32>
    %54 = vector.extract_strided_slice %53 {offsets = [0, 0, 0], sizes = [1, 1, 128], strides = [1, 1, 1]} : vector<1x4x128xf32> to vector<1x1x128xf32>
    %55 = vector.broadcast %54 : vector<1x1x128xf32> to vector<1x32x128xf32>
    %56 = arith.mulf %4, %55 : vector<1x32x128xf32>
    %57 = vector.extract_strided_slice %53 {offsets = [0, 1, 0], sizes = [1, 1, 128], strides = [1, 1, 1]} : vector<1x4x128xf32> to vector<1x1x128xf32>
    %58 = vector.broadcast %57 : vector<1x1x128xf32> to vector<1x32x128xf32>
    %59 = arith.mulf %8, %58 : vector<1x32x128xf32>
    %60 = arith.addf %56, %59 : vector<1x32x128xf32>
    %61 = vector.extract_strided_slice %53 {offsets = [0, 2, 0], sizes = [1, 1, 128], strides = [1, 1, 1]} : vector<1x4x128xf32> to vector<1x1x128xf32>
    %62 = vector.broadcast %61 : vector<1x1x128xf32> to vector<1x32x128xf32>
    %63 = arith.mulf %12, %62 : vector<1x32x128xf32>
    %64 = arith.addf %60, %63 : vector<1x32x128xf32>
    %65 = vector.extract_strided_slice %53 {offsets = [0, 3, 0], sizes = [1, 1, 128], strides = [1, 1, 1]} : vector<1x4x128xf32> to vector<1x1x128xf32>
    %66 = vector.broadcast %65 : vector<1x1x128xf32> to vector<1x32x128xf32>
    %67 = arith.mulf %16, %66 : vector<1x32x128xf32>
    %68 = arith.addf %64, %67 : vector<1x32x128xf32>
    %cst_13 = arith.constant dense<0xFF800000> : vector<1x32xf32>
    %69 = vector.multi_reduction <maximumf>, %68, %cst_13 [2] : vector<1x32x128xf32> to vector<1x32xf32>
    %c2_14 = arith.constant 2 : index
    %c0_15 = arith.constant 0 : index
    %70 = vector.load %arg8[%c2_14, %c0_15] : memref<8x32xf32, #tpu.memory_space<vmem>>, vector<1x32xf32>
    tpu.vector_store %arg8[%c2_14, %c0_15], %69 {strides = array<i32>} : memref<8x32xf32, #tpu.memory_space<vmem>>, vector<1x32xf32>,
    %c3 = arith.constant 3 : index
    %c0_16 = arith.constant 0 : index
    %c0_17 = arith.constant 0 : index
    %71 = vector.load %arg1[%c3, %c0_16, %c0_17] : memref<8x4x128xf32, #tpu.memory_space<vmem>>, vector<1x4x128xf32>
    %72 = vector.extract_strided_slice %71 {offsets = [0, 0, 0], sizes = [1, 1, 128], strides = [1, 1, 1]} : vector<1x4x128xf32> to vector<1x1x128xf32>
    %73 = vector.broadcast %72 : vector<1x1x128xf32> to vector<1x32x128xf32>
    %74 = arith.mulf %4, %73 : vector<1x32x128xf32>
    %75 = vector.extract_strided_slice %71 {offsets = [0, 1, 0], sizes = [1, 1, 128], strides = [1, 1, 1]} : vector<1x4x128xf32> to vector<1x1x128xf32>
    %76 = vector.broadcast %75 : vector<1x1x128xf32> to vector<1x32x128xf32>
    %77 = arith.mulf %8, %76 : vector<1x32x128xf32>
    %78 = arith.addf %74, %77 : vector<1x32x128xf32>
    %79 = vector.extract_strided_slice %71 {offsets = [0, 2, 0], sizes = [1, 1, 128], strides = [1, 1, 1]} : vector<1x4x128xf32> to vector<1x1x128xf32>
    %80 = vector.broadcast %79 : vector<1x1x128xf32> to vector<1x32x128xf32>
    %81 = arith.mulf %12, %80 : vector<1x32x128xf32>
    %82 = arith.addf %78, %81 : vector<1x32x128xf32>
    %83 = vector.extract_strided_slice %71 {offsets = [0, 3, 0], sizes = [1, 1, 128], strides = [1, 1, 1]} : vector<1x4x128xf32> to vector<1x1x128xf32>
    %84 = vector.broadcast %83 : vector<1x1x128xf32> to vector<1x32x128xf32>
    %85 = arith.mulf %16, %84 : vector<1x32x128xf32>
    %86 = arith.addf %82, %85 : vector<1x32x128xf32>
    %cst_18 = arith.constant dense<0xFF800000> : vector<1x32xf32>
    %87 = vector.multi_reduction <maximumf>, %86, %cst_18 [2] : vector<1x32x128xf32> to vector<1x32xf32>
    %c3_19 = arith.constant 3 : index
    %c0_20 = arith.constant 0 : index
    %88 = vector.load %arg8[%c3_19, %c0_20] : memref<8x32xf32, #tpu.memory_space<vmem>>, vector<1x32xf32>
    tpu.vector_store %arg8[%c3_19, %c0_20], %87 {strides = array<i32>} : memref<8x32xf32, #tpu.memory_space<vmem>>, vector<1x32xf32>,
    %c4 = arith.constant 4 : index
    %c0_21 = arith.constant 0 : index
    %c0_22 = arith.constant 0 : index
    %89 = vector.load %arg1[%c4, %c0_21, %c0_22] : memref<8x4x128xf32, #tpu.memory_space<vmem>>, vector<1x4x128xf32>
    %90 = vector.extract_strided_slice %89 {offsets = [0, 0, 0], sizes = [1, 1, 128], strides = [1, 1, 1]} : vector<1x4x128xf32> to vector<1x1x128xf32>
    %91 = vector.broadcast %90 : vector<1x1x128xf32> to vector<1x32x128xf32>
    %92 = arith.mulf %4, %91 : vector<1x32x128xf32>
    %93 = vector.extract_strided_slice %89 {offsets = [0, 1, 0], sizes = [1, 1, 128], strides = [1, 1, 1]} : vector<1x4x128xf32> to vector<1x1x128xf32>
    %94 = vector.broadcast %93 : vector<1x1x128xf32> to vector<1x32x128xf32>
    %95 = arith.mulf %8, %94 : vector<1x32x128xf32>
    %96 = arith.addf %92, %95 : vector<1x32x128xf32>
    %97 = vector.extract_strided_slice %89 {offsets = [0, 2, 0], sizes = [1, 1, 128], strides = [1, 1, 1]} : vector<1x4x128xf32> to vector<1x1x128xf32>
    %98 = vector.broadcast %97 : vector<1x1x128xf32> to vector<1x32x128xf32>
    %99 = arith.mulf %12, %98 : vector<1x32x128xf32>
    %100 = arith.addf %96, %99 : vector<1x32x128xf32>
    %101 = vector.extract_strided_slice %89 {offsets = [0, 3, 0], sizes = [1, 1, 128], strides = [1, 1, 1]} : vector<1x4x128xf32> to vector<1x1x128xf32>
    %102 = vector.broadcast %101 : vector<1x1x128xf32> to vector<1x32x128xf32>
    %103 = arith.mulf %16, %102 : vector<1x32x128xf32>
    %104 = arith.addf %100, %103 : vector<1x32x128xf32>
    %cst_23 = arith.constant dense<0xFF800000> : vector<1x32xf32>
    %105 = vector.multi_reduction <maximumf>, %104, %cst_23 [2] : vector<1x32x128xf32> to vector<1x32xf32>
    %c4_24 = arith.constant 4 : index
    %c0_25 = arith.constant 0 : index
    %106 = vector.load %arg8[%c4_24, %c0_25] : memref<8x32xf32, #tpu.memory_space<vmem>>, vector<1x32xf32>
    tpu.vector_store %arg8[%c4_24, %c0_25], %105 {strides = array<i32>} : memref<8x32xf32, #tpu.memory_space<vmem>>, vector<1x32xf32>,
    %c5 = arith.constant 5 : index
    %c0_26 = arith.constant 0 : index
    %c0_27 = arith.constant 0 : index
    %107 = vector.load %arg1[%c5, %c0_26, %c0_27] : memref<8x4x128xf32, #tpu.memory_space<vmem>>, vector<1x4x128xf32>
    %108 = vector.extract_strided_slice %107 {offsets = [0, 0, 0], sizes = [1, 1, 128], strides = [1, 1, 1]} : vector<1x4x128xf32> to vector<1x1x128xf32>
    %109 = vector.broadcast %108 : vector<1x1x128xf32> to vector<1x32x128xf32>
    %110 = arith.mulf %4, %109 : vector<1x32x128xf32>
    %111 = vector.extract_strided_slice %107 {offsets = [0, 1, 0], sizes = [1, 1, 128], strides = [1, 1, 1]} : vector<1x4x128xf32> to vector<1x1x128xf32>
    %112 = vector.broadcast %111 : vector<1x1x128xf32> to vector<1x32x128xf32>
    %113 = arith.mulf %8, %112 : vector<1x32x128xf32>
    %114 = arith.addf %110, %113 : vector<1x32x128xf32>
    %115 = vector.extract_strided_slice %107 {offsets = [0, 2, 0], sizes = [1, 1, 128], strides = [1, 1, 1]} : vector<1x4x128xf32> to vector<1x1x128xf32>
    %116 = vector.broadcast %115 : vector<1x1x128xf32> to vector<1x32x128xf32>
    %117 = arith.mulf %12, %116 : vector<1x32x128xf32>
    %118 = arith.addf %114, %117 : vector<1x32x128xf32>
    %119 = vector.extract_strided_slice %107 {offsets = [0, 3, 0], sizes = [1, 1, 128], strides = [1, 1, 1]} : vector<1x4x128xf32> to vector<1x1x128xf32>
    %120 = vector.broadcast %119 : vector<1x1x128xf32> to vector<1x32x128xf32>
    %121 = arith.mulf %16, %120 : vector<1x32x128xf32>
    %122 = arith.addf %118, %121 : vector<1x32x128xf32>
    %cst_28 = arith.constant dense<0xFF800000> : vector<1x32xf32>
    %123 = vector.multi_reduction <maximumf>, %122, %cst_28 [2] : vector<1x32x128xf32> to vector<1x32xf32>
    %c5_29 = arith.constant 5 : index
    %c0_30 = arith.constant 0 : index
    %124 = vector.load %arg8[%c5_29, %c0_30] : memref<8x32xf32, #tpu.memory_space<vmem>>, vector<1x32xf32>
    tpu.vector_store %arg8[%c5_29, %c0_30], %123 {strides = array<i32>} : memref<8x32xf32, #tpu.memory_space<vmem>>, vector<1x32xf32>,
    %c6 = arith.constant 6 : index
    %c0_31 = arith.constant 0 : index
    %c0_32 = arith.constant 0 : index
    %125 = vector.load %arg1[%c6, %c0_31, %c0_32] : memref<8x4x128xf32, #tpu.memory_space<vmem>>, vector<1x4x128xf32>
    %126 = vector.extract_strided_slice %125 {offsets = [0, 0, 0], sizes = [1, 1, 128], strides = [1, 1, 1]} : vector<1x4x128xf32> to vector<1x1x128xf32>
    %127 = vector.broadcast %126 : vector<1x1x128xf32> to vector<1x32x128xf32>
    %128 = arith.mulf %4, %127 : vector<1x32x128xf32>
    %129 = vector.extract_strided_slice %125 {offsets = [0, 1, 0], sizes = [1, 1, 128], strides = [1, 1, 1]} : vector<1x4x128xf32> to vector<1x1x128xf32>
    %130 = vector.broadcast %129 : vector<1x1x128xf32> to vector<1x32x128xf32>
    %131 = arith.mulf %8, %130 : vector<1x32x128xf32>
    %132 = arith.addf %128, %131 : vector<1x32x128xf32>
    %133 = vector.extract_strided_slice %125 {offsets = [0, 2, 0], sizes = [1, 1, 128], strides = [1, 1, 1]} : vector<1x4x128xf32> to vector<1x1x128xf32>
    %134 = vector.broadcast %133 : vector<1x1x128xf32> to vector<1x32x128xf32>
    %135 = arith.mulf %12, %134 : vector<1x32x128xf32>
    %136 = arith.addf %132, %135 : vector<1x32x128xf32>
    %137 = vector.extract_strided_slice %125 {offsets = [0, 3, 0], sizes = [1, 1, 128], strides = [1, 1, 1]} : vector<1x4x128xf32> to vector<1x1x128xf32>
    %138 = vector.broadcast %137 : vector<1x1x128xf32> to vector<1x32x128xf32>
    %139 = arith.mulf %16, %138 : vector<1x32x128xf32>
    %140 = arith.addf %136, %139 : vector<1x32x128xf32>
    %cst_33 = arith.constant dense<0xFF800000> : vector<1x32xf32>
    %141 = vector.multi_reduction <maximumf>, %140, %cst_33 [2] : vector<1x32x128xf32> to vector<1x32xf32>
    %c6_34 = arith.constant 6 : index
    %c0_35 = arith.constant 0 : index
    %142 = vector.load %arg8[%c6_34, %c0_35] : memref<8x32xf32, #tpu.memory_space<vmem>>, vector<1x32xf32>
    tpu.vector_store %arg8[%c6_34, %c0_35], %141 {strides = array<i32>} : memref<8x32xf32, #tpu.memory_space<vmem>>, vector<1x32xf32>,
    %c7 = arith.constant 7 : index
    %c0_36 = arith.constant 0 : index
    %c0_37 = arith.constant 0 : index
    %143 = vector.load %arg1[%c7, %c0_36, %c0_37] : memref<8x4x128xf32, #tpu.memory_space<vmem>>, vector<1x4x128xf32>
    %144 = vector.extract_strided_slice %143 {offsets = [0, 0, 0], sizes = [1, 1, 128], strides = [1, 1, 1]} : vector<1x4x128xf32> to vector<1x1x128xf32>
    %145 = vector.broadcast %144 : vector<1x1x128xf32> to vector<1x32x128xf32>
    %146 = arith.mulf %4, %145 : vector<1x32x128xf32>
    %147 = vector.extract_strided_slice %143 {offsets = [0, 1, 0], sizes = [1, 1, 128], strides = [1, 1, 1]} : vector<1x4x128xf32> to vector<1x1x128xf32>
    %148 = vector.broadcast %147 : vector<1x1x128xf32> to vector<1x32x128xf32>
    %149 = arith.mulf %8, %148 : vector<1x32x128xf32>
    %150 = arith.addf %146, %149 : vector<1x32x128xf32>
    %151 = vector.extract_strided_slice %143 {offsets = [0, 2, 0], sizes = [1, 1, 128], strides = [1, 1, 1]} : vector<1x4x128xf32> to vector<1x1x128xf32>
    %152 = vector.broadcast %151 : vector<1x1x128xf32> to vector<1x32x128xf32>
    %153 = arith.mulf %12, %152 : vector<1x32x128xf32>
    %154 = arith.addf %150, %153 : vector<1x32x128xf32>
    %155 = vector.extract_strided_slice %143 {offsets = [0, 3, 0], sizes = [1, 1, 128], strides = [1, 1, 1]} : vector<1x4x128xf32> to vector<1x1x128xf32>
    %156 = vector.broadcast %155 : vector<1x1x128xf32> to vector<1x32x128xf32>
    %157 = arith.mulf %16, %156 : vector<1x32x128xf32>
    %158 = arith.addf %154, %157 : vector<1x32x128xf32>
    %cst_38 = arith.constant dense<0xFF800000> : vector<1x32xf32>
    %159 = vector.multi_reduction <maximumf>, %158, %cst_38 [2] : vector<1x32x128xf32> to vector<1x32xf32>
    %c7_39 = arith.constant 7 : index
    %c0_40 = arith.constant 0 : index
    %160 = vector.load %arg8[%c7_39, %c0_40] : memref<8x32xf32, #tpu.memory_space<vmem>>, vector<1x32xf32>
    tpu.vector_store %arg8[%c7_39, %c0_40], %159 {strides = array<i32>} : memref<8x32xf32, #tpu.memory_space<vmem>>, vector<1x32xf32>,
    %c0_41 = arith.constant 0 : index
    %c0_42 = arith.constant 0 : index
    %161 = vector.load %arg8[%c0_41, %c0_42] : memref<8x32xf32, #tpu.memory_space<vmem>>, vector<8x32xf32>
    %c0_43 = arith.constant 0 : index
    %c0_44 = arith.constant 0 : index
    %162 = vector.load %arg3[%c0_43, %c0_44] : memref<2x32xf32, #tpu.memory_space<vmem>>, vector<1x32xf32>
    %163 = vector.broadcast %162 : vector<1x32xf32> to vector<8x32xf32>
    %164 = arith.addf %161, %163 : vector<8x32xf32>
    %cst_45 = arith.constant 0.000000e+00 : f32
    %165 = vector.broadcast %cst_45 : f32 to vector<8x32xf32>
    %166 = arith.maximumf %164, %165 : vector<8x32xf32>
    %c0_46 = arith.constant 0 : index
    %c0_47 = arith.constant 0 : index
    %167 = vector.load %arg4[%c0_46, %c0_47] : memref<32x32xf32, #tpu.memory_space<vmem>>, vector<32x32xf32>
    %cst_48 = arith.constant dense<0.000000e+00> : vector<8x32xf32>
    %168 = tpu.matmul %166, %167, %cst_48 {dimension_numbers = #tpu.dot_dimension_numbers<[1], [0], [0], [1], [0, 0, 1, 1], [], []>} : vector<8x32xf32>, vector<32x32xf32>, vector<8x32xf32> -> vector<8x32xf32>
    %c1_49 = arith.constant 1 : index
    %c0_50 = arith.constant 0 : index
    %169 = vector.load %arg3[%c1_49, %c0_50] : memref<2x32xf32, #tpu.memory_space<vmem>>, vector<1x32xf32>
    %170 = vector.broadcast %169 : vector<1x32xf32> to vector<8x32xf32>
    %171 = arith.addf %168, %170 : vector<8x32xf32>
    %cst_51 = arith.constant 0.000000e+00 : f32
    %172 = vector.broadcast %cst_51 : f32 to vector<8x32xf32>
    %173 = arith.maximumf %171, %172 : vector<8x32xf32>
    %c0_52 = arith.constant 0 : index
    %c0_53 = arith.constant 0 : index
    %174 = vector.load %arg5[%c0_52, %c0_53] : memref<32x16xf32, #tpu.memory_space<vmem>>, vector<32x16xf32>
    %cst_54 = arith.constant dense<0.000000e+00> : vector<8x16xf32>
    %175 = tpu.matmul %173, %174, %cst_54 {dimension_numbers = #tpu.dot_dimension_numbers<[1], [0], [0], [1], [0, 0, 1, 1], [], []>} : vector<8x32xf32>, vector<32x16xf32>, vector<8x16xf32> -> vector<8x16xf32>
    %c0_55 = arith.constant 0 : index
    %c0_56 = arith.constant 0 : index
    %176 = vector.load %arg6[%c0_55, %c0_56] : memref<2x16xf32, #tpu.memory_space<vmem>>, vector<1x16xf32>
    %177 = vector.broadcast %176 : vector<1x16xf32> to vector<8x16xf32>
    %178 = arith.addf %175, %177 : vector<8x16xf32>
    %cst_57 = arith.constant 0.000000e+00 : f32
    %179 = vector.broadcast %cst_57 : f32 to vector<8x16xf32>
    %180 = arith.maximumf %178, %179 : vector<8x16xf32>
    %c1_58 = arith.constant 1 : index
    %c0_59 = arith.constant 0 : index
    %181 = vector.load %arg6[%c1_58, %c0_59] : memref<2x16xf32, #tpu.memory_space<vmem>>, vector<1x16xf32>
    %182 = vector.broadcast %181 : vector<1x16xf32> to vector<8x16xf32>
    %183 = arith.addf %180, %182 : vector<8x16xf32>
    %184 = vector.extract_strided_slice %183 {offsets = [0, 0], sizes = [1, 16], strides = [1, 1]} : vector<8x16xf32> to vector<1x16xf32>
    %c0_60 = arith.constant 0 : index
    %c0_61 = arith.constant 0 : index
    %185 = vector.load %arg7[%c0_60, %c0_61] : memref<1x128xf32, #tpu.memory_space<vmem>>, vector<1x16xf32>
    tpu.vector_store %arg7[%c0_60, %c0_61], %184 {strides = array<i32>} : memref<1x128xf32, #tpu.memory_space<vmem>>, vector<1x16xf32>,
    %186 = vector.extract_strided_slice %183 {offsets = [1, 0], sizes = [1, 16], strides = [1, 1]} : vector<8x16xf32> to vector<1x16xf32>
    %c0_62 = arith.constant 0 : index
    %c16 = arith.constant 16 : index
    %187 = vector.load %arg7[%c0_62, %c16] : memref<1x128xf32, #tpu.memory_space<vmem>>, vector<1x16xf32>
    tpu.vector_store %arg7[%c0_62, %c16], %186 {strides = array<i32>} : memref<1x128xf32, #tpu.memory_space<vmem>>, vector<1x16xf32>,
    %188 = vector.extract_strided_slice %183 {offsets = [2, 0], sizes = [1, 16], strides = [1, 1]} : vector<8x16xf32> to vector<1x16xf32>
    %c0_63 = arith.constant 0 : index
    %c32 = arith.constant 32 : index
    %189 = vector.load %arg7[%c0_63, %c32] : memref<1x128xf32, #tpu.memory_space<vmem>>, vector<1x16xf32>
    tpu.vector_store %arg7[%c0_63, %c32], %188 {strides = array<i32>} : memref<1x128xf32, #tpu.memory_space<vmem>>, vector<1x16xf32>,
    %190 = vector.extract_strided_slice %183 {offsets = [3, 0], sizes = [1, 16], strides = [1, 1]} : vector<8x16xf32> to vector<1x16xf32>
    %c0_64 = arith.constant 0 : index
    %c48 = arith.constant 48 : index
    %191 = vector.load %arg7[%c0_64, %c48] : memref<1x128xf32, #tpu.memory_space<vmem>>, vector<1x16xf32>
    tpu.vector_store %arg7[%c0_64, %c48], %190 {strides = array<i32>} : memref<1x128xf32, #tpu.memory_space<vmem>>, vector<1x16xf32>,
    %192 = vector.extract_strided_slice %183 {offsets = [4, 0], sizes = [1, 16], strides = [1, 1]} : vector<8x16xf32> to vector<1x16xf32>
    %c0_65 = arith.constant 0 : index
    %c64 = arith.constant 64 : index
    %193 = vector.load %arg7[%c0_65, %c64] : memref<1x128xf32, #tpu.memory_space<vmem>>, vector<1x16xf32>
    tpu.vector_store %arg7[%c0_65, %c64], %192 {strides = array<i32>} : memref<1x128xf32, #tpu.memory_space<vmem>>, vector<1x16xf32>,
    %194 = vector.extract_strided_slice %183 {offsets = [5, 0], sizes = [1, 16], strides = [1, 1]} : vector<8x16xf32> to vector<1x16xf32>
    %c0_66 = arith.constant 0 : index
    %c80 = arith.constant 80 : index
    %195 = vector.load %arg7[%c0_66, %c80] : memref<1x128xf32, #tpu.memory_space<vmem>>, vector<1x16xf32>
    tpu.vector_store %arg7[%c0_66, %c80], %194 {strides = array<i32>} : memref<1x128xf32, #tpu.memory_space<vmem>>, vector<1x16xf32>,
    %196 = vector.extract_strided_slice %183 {offsets = [6, 0], sizes = [1, 16], strides = [1, 1]} : vector<8x16xf32> to vector<1x16xf32>
    %c0_67 = arith.constant 0 : index
    %c96 = arith.constant 96 : index
    %197 = vector.load %arg7[%c0_67, %c96] : memref<1x128xf32, #tpu.memory_space<vmem>>, vector<1x16xf32>
    tpu.vector_store %arg7[%c0_67, %c96], %196 {strides = array<i32>} : memref<1x128xf32, #tpu.memory_space<vmem>>, vector<1x16xf32>,
    %198 = vector.extract_strided_slice %183 {offsets = [7, 0], sizes = [1, 16], strides = [1, 1]} : vector<8x16xf32> to vector<1x16xf32>
    %c0_68 = arith.constant 0 : index
    %c112 = arith.constant 112 : index
    %199 = vector.load %arg7[%c0_68, %c112] : memref<1x128xf32, #tpu.memory_space<vmem>>, vector<1x16xf32>
    tpu.vector_store %arg7[%c0_68, %c112], %198 {strides = array<i32>} : memref<1x128xf32, #tpu.memory_space<vmem>>, vector<1x16xf32>,
    return
  }
  func.func @transform_0(%arg0: i32) -> (i32, i32, i32) {
    %c0_i32 = arith.constant 0 : i32
    %c0_i32_0 = arith.constant 0 : i32
    %c0_i32_1 = arith.constant 0 : i32
    return %arg0, %c0_i32, %c0_i32_0 : i32, i32, i32
  }
  func.func @transform_1(%arg0: i32) -> (i32, i32) {
    %c0_i32 = arith.constant 0 : i32
    %c0_i32_0 = arith.constant 0 : i32
    %c0_i32_1 = arith.constant 0 : i32
    return %c0_i32, %c0_i32_0 : i32, i32
  }
  func.func @transform_2(%arg0: i32) -> (i32, i32) {
    %c0_i32 = arith.constant 0 : i32
    %c0_i32_0 = arith.constant 0 : i32
    %c0_i32_1 = arith.constant 0 : i32
    return %c0_i32, %c0_i32_0 : i32, i32
  }
  func.func @transform_3(%arg0: i32) -> (i32, i32) {
    %c0_i32 = arith.constant 0 : i32
    %c0_i32_0 = arith.constant 0 : i32
    %c0_i32_1 = arith.constant 0 : i32
    return %c0_i32, %c0_i32_0 : i32, i32
  }
  func.func @transform_4(%arg0: i32) -> (i32, i32) {
    %c0_i32 = arith.constant 0 : i32
    %c0_i32_0 = arith.constant 0 : i32
    %c0_i32_1 = arith.constant 0 : i32
    return %c0_i32, %c0_i32_0 : i32, i32
  }
  func.func @transform_5(%arg0: i32) -> (i32, i32) {
    %c0_i32 = arith.constant 0 : i32
    %c0_i32_0 = arith.constant 0 : i32
    %c0_i32_1 = arith.constant 0 : i32
    return %c0_i32, %c0_i32_0 : i32, i32
  }
  func.func @transform_6(%arg0: i32) -> (i32, i32) {
    %c0_i32 = arith.constant 0 : i32
    %c0_i32_0 = arith.constant 0 : i32
    return %c0_i32, %arg0 : i32, i32
  }
}

</mosaic_0001>

<bundles_post_ra>
// kernel: tpu_custom_call.1
= control target key start
LH: loop header
LB: loop body
LE: loop exit
PB: predicated region body
PF: predicated region fallthrough
CT: control target
= control target key end

     0   :  { %11 = vsyncpa [#allocation4], 0  ;;  %s2199_s0 = inlined_call_operand.vmem [shape: f32[16,4,128], index: 0, kind: input, shape index: {}]   ;;  %s2200_s1 = inlined_call_operand.vmem [shape: f32[32,4], index: 1, kind: input, shape index: {}]   ;;  %s2201_s2 = inlined_call_operand.vmem [shape: f32[2,32], index: 2, kind: input, shape index: {}]   ;;  %s2202_s3 = inlined_call_operand.hbm [shape: f32[32,32], index: 3, kind: input, shape index: {}]   ;;  %s2203_s4 = inlined_call_operand.vmem [shape: f32[32,16], index: 4, kind: input, shape index: {}]   ;;  %s2204_s5 = inlined_call_operand.vmem [shape: f32[2,16], index: 5, kind: input, shape index: {}]   ;;  %s2205_s6 = inlined_call_operand.hbm [shape: f32[1,256], index: 6, kind: output, shape index: {}]  }
   0x1   :  { %12 = vsyncpa [#allocation5], 0 }
   0x2   :  { %14 = vsyncpa [#allocation5 + $0x1], 0  ;;  %s1548_s21 = smov 0   ;;  %s1550_s22 = smov 0  }
   0x3   :  { %s1552_s23 = smov 0   ;;  %s1554_s24 = smov 0  }
   0x4 LB: > { %s1569_s25 = sadd.s32 4294967295, %s1494_s24   ;;  %s1277_s26 = sadd.s32 4294967294, %s1494_s24   ;;  %s1494_s24 = sphi %s1554_s24, %s2271_s24   ;;  %s1490_s23 = sphi %s1552_s23, %s2270_s23   ;;  %s1486_s22 = sphi %s1550_s22, %s2269_s22   ;;  %s1482_s21 = sphi %s1548_s21, %s2268_s21  }
   0x5   : > { %s1573_s27 = sadd.s32 1, %s1494_s24   ;;  %s158_s28 = sadd.s32 1, %s1490_s23 }
   0x6   : > { %s155_s29 = ssub.s32 %s1494_s24, %s1573_s27  ;;  %p168_p0 = scmp.ne.s32.totalorder %s1490_s23, %s1486_s22 }
   0x7   : > { %p156_p1 = scmp.eq.s32.totalorder %s155_s29, 0  ;;  %p169_p2 = scmp.eq.s32.totalorder %s1569_s25, 1 }
   0x8   : > { %p174_p3 = scmp.ne.s32.totalorder %s1486_s22, %s1482_s21  ;;  %p175_p4 = scmp.eq.s32.totalorder %s1277_s26, 1 }
   0x9   : > { %s1584_s30 = scalar_select %p156_p1, %s1490_s23, %s158_s28  }
   0xa   : > { %p1586_p5 = por %p169_p2, %p168_p0  ;;  %p1590_p6 = por %p175_p4, %p174_p3 }
   0xb   : > { %p1278_p7 = scmp.ge.s32.totalorder %s1494_s24, 1  ;;  %p182_p8 = scmp.lt.s32.totalorder %s1494_s24, 3 }
   0xc   : > { %s2230_s8 = scalar_select %p1590_p6, 1, 0 }
   0xd   : > { %p1347_p9 = scmp.eq.s32.totalorder %s1569_s25, 0  ;;  %p1597_p10 = pnand %p1278_p7, %p182_p8 }
   0xe   : > { %s1496_s10 = smov [#allocation3]  }
   0xf   : > { %s200_s11 = sshll.u32 %s1496_s10, 4  ;;  %p1339_p11 = pneg %p1597_p10  ;;  %s201_s11 = int_to_ptr.vmem [resolvable:$true] %s200_s11 }
  0x10   : > { %s1415_s12 = scalar_lea.vmem %s201_s11, 512  ;;  %p1423_p3 = scmp.lt.s32.totalorder %s201_s11, %s201_s11 }
  0x11   : > { %p1340_p12 = pnand %p1347_p9, %p1339_p11  ;;  %p1416_p0 = scmp.ne.s32.totalorder %s201_s11, %s1415_s12 }
  0x12   : > { %p1424_p4 = scmp.lt.s32.totalorder %s1415_s12, %s1415_s12 }
  0x13   : > { %p1406_p13 = pneg %p1340_p12 }
  0x14   : > { %p1425_p6 = por %p1424_p4, %p1423_p3 }
  0x15   : > { %p1418_p1 = pnand %p1416_p0, %p1406_p13 }
  0x17   : > { %p1419_p2 = pneg %p1418_p1 }
  0x19   : > { %p1426_p7 = pnand %p1425_p6, %p1419_p2 }
  0x1b   : > { %1429 = shalt.err (!%p1426_p7)
}
  0x1c   : > { %s1497_s13 = smov 128   ;;  %s1498_s14 = smov 8  }
  0x1d   : > { %1342 = dma.hbm_to_vmem [thread:$0]  (!%p1340_p12), %s2202_s3, 512, %s201_s11, [#allocation4], %s1497_s13, %s1497_s13, %s1498_s14  }
  0x1e   : > { %231 = sbr.rel (%p1597_p10) target bundleno = 946 (0x3b2), region = 44 }
  0x23   : > { %1473 = dma.done.wait (%p1347_p9), [#allocation4], 512  }
  0x24   : > { %1475 = vsyncadd (%p1347_p9), [#allocation4], 4294966784  ;;  %v1499_v0 = vmov 1   ;;  %v1500_v1 = vmov 0   ;;  %v266_v2 = vld [vmem:[%s2200_s1] sm:$0xff]  ;;  %v267_v3 = vld [vmem:[%s2200_s1 + $0x8] sm:$0xff]  ;;  %v2206_v10 = vlaneseq }
  0x25   : > { %1399 = vset.pattern.permute.xlu1 %v1499_v0  ;;  %1398 = vset.pattern.permute.xlu0 %v1500_v1  ;;  %v268_v4 = vld [vmem:[%s2200_s1 + $0x10] sm:$0xff]  ;;  %v269_v5 = vld [vmem:[%s2200_s1 + $0x18] sm:$0xff]  ;;  %v1501_v6 = vmov 2   ;;  %v1502_v7 = vmov 3   ;;  %s1283_s10 = sshll.u32 %s1569_s25, 3  ;;  %vm1504_vm0 = vmmov 0  }
  0x26   : > { %291 = vperm.xlu1 %1399, %v266_v2   ;;  %272 = vperm.xlu0 %1398, %v266_v2   ;;  %p261_p6 = scmp.lt.s32.totalorder %s1283_s10, 15  ;;  %v1636_v13 = vshrl.u32 %v2206_v10, 7  ;;  %vm406_vm1 = vcmask 130112   ;;  %vm413_vm2 = vcmask 195712   ;;  %vm420_vm3 = vcmask 261312   ;;  %s1505_s17 = smov 32  }
  0x27   : > { %vm423_vm4 = vcmask 253952   ;;  %vm995_vm5 = vcmask 261120   ;;  %vm1159_vm6 = vcmask 122880   ;;  %s1506_s18 = smov 16   ;;  %s1507_s20 = smov 80   ;;  %vm1165_vm7 = vcmask 255105  }
  0x28   : > { %s2273_s10 = smov (!%p261_p6, %s1283_s10), 15  ;;  %2232 = vst [vmem:[#allocation9_spill] sm:$0xff] %v1636_v13  ;;  %v341_v16 = vsub.s32 0, %v1636_v13  ;;  %v349_v17 = vsub.s32 1, %v1636_v13  ;;  %v361_v27 = vsub.s32 2, %v1636_v13  ;;  %v373_v36 = vsub.s32 3, %v1636_v13 }
  0x29   : > { %s1284_s11 = sshll.u32 %s2273_s10, 2  ;;  %s1508_s26 = smov 48   ;;  %vm1170_vm8 = vcmask 387330   ;;  %vm1175_vm9 = vcmask 519555   ;;  %vm1180_vm10 = vcmask 651780   ;;  %vm1185_vm11 = vcmask 784005  }
  0x2a   : > { %295 = vperm.xlu1 %1399, %v267_v3   ;;  %277 = vperm.xlu0 %1398, %v267_v3   ;;  %s264_s14 = scalar_lea.vmem %s2199_s0, %s1284_s11  ;;  %s1509_s28 = smov 112   ;;  %vm1190_vm12 = vcmask 916230   ;;  %vm1195_vm13 = vcmask 1048455  }
  0x2b   : > { %v338_v18 = vld [vmem:[%s264_s14] sm:$0xf]  ;;  %v1285_v19 = vld [vmem:[%s264_s14 + $0x4] sm:$0xf]  ;;  %v1286_v20 = vld [vmem:[%s264_s14 + $0x8] sm:$0xf] }
  0x2c   : > { %v1287_v21 = vld [vmem:[%s264_s14 + $0xc] sm:$0xf]  ;;  %v1288_v24 = vld [vmem:[%s264_s14 + $0x10] sm:$0xf]  ;;  %v1651_v25 = vrot.slane %v338_v18, %v341_v16  ;;  %v1653_v26 = vrot.slane %v338_v18, %v349_v17  ;;  %v1656_v28 = vrot.slane %v1285_v19, %v341_v16  ;;  %v1289_v29 = vld [vmem:[%s264_s14 + $0x14] sm:$0xf]  ;;  %v1658_v31 = vrot.slane %v1285_v19, %v349_v17 }
  0x2d   : > { %v1290_v30 = vld [vmem:[%s264_s14 + $0x18] sm:$0xf]  ;;  %v1660_v32 = vrot.slane %v1286_v20, %v341_v16  ;;  %v1662_v33 = vrot.slane %v1286_v20, %v349_v17  ;;  %v1664_v34 = vrot.slane %v1287_v21, %v341_v16  ;;  %v1291_v35 = vld [vmem:[%s264_s14 + $0x1c] sm:$0xf]  ;;  %v1667_v37 = vrot.slane %v1287_v21, %v349_v17  ;;  %s258_s14 = sand.u32 1, %s1486_s22   ;;  %s1510_s29 = smov 64  }
  0x2e   : > { %299 = vperm.xlu1 %1399, %v268_v4   ;;  %282 = vperm.xlu0 %1398, %v268_v4   ;;  %2235 = vst [vmem:[#allocation12_spill] sm:$0xff] %v1656_v28  ;;  %2236 = vst [vmem:[#allocation13_spill] sm:$0xff] %v1658_v31  ;;  %v1669_v38 = vrot.slane %v1288_v24, %v341_v16  ;;  %v1671_v39 = vrot.slane %v1288_v24, %v349_v17  ;;  %s2141_s19 = scalar_lea.vmem [#allocation6], %s258_s14  ;;  %s1511_s9 = smov 96  }
  0x2f   : > { %2237 = vst [vmem:[#allocation14_spill] sm:$0xff] %v1662_v33  ;;  %v1673_v40 = vrot.slane %v1289_v29, %v341_v16  ;;  %v1675_v41 = vrot.slane %v1289_v29, %v349_v17  ;;  %v1677_v42 = vrot.slane %v1290_v30, %v341_v16  ;;  %v1679_v43 = vrot.slane %v1290_v30, %v349_v17  ;;  %s1298_s10 = sshll.u32 %s1569_s25, 4  ;;  %s1210_s11 = sshll.u32 %s2141_s19, 4  ;;  %s2156_s11 = int_to_ptr.vmem [resolvable:$true] %s1210_s11 }
  0x30   : > { %2238 = vst [vmem:[#allocation15_spill] sm:$0xff] %v1669_v38  ;;  %v1685_v46 = vrot.slane %v338_v18, %v361_v27  ;;  %v1687_v47 = vrot.slane %v1285_v19, %v361_v27  ;;  %v1689_v48 = vrot.slane %v1291_v35, %v341_v16  ;;  %v1691_v49 = vrot.slane %v1291_v35, %v349_v17  ;;  %s2154_s15 = scalar_lea.hbm %s2205_s6, %s1298_s10  ;;  %s1198_s25 = scalar_lea.sflag [#allocation5], %s258_s14 }
  0x31   : > { %v1693_v50 = vrot.slane %v1286_v20, %v361_v27  ;;  %v1695_v51 = vrot.slane %v1287_v21, %v361_v27  ;;  %v1697_v52 = vrot.slane %v1288_v24, %v361_v27  ;;  %v1699_v53 = vrot.slane %v1289_v29, %v361_v27  ;;  %s1430_s16 = scalar_lea.vmem %s2156_s11, 16 }
  0x32   : > { %303 = vperm.xlu1 %1399, %v269_v5   ;;  %287 = vperm.xlu0 %1398, %v269_v5   ;;  %2239 = vst [vmem:[#allocation16_spill] sm:$0xff] %v1685_v46  ;;  %2240 = vst [vmem:[#allocation17_spill] sm:$0xff] %v1687_v47  ;;  %v1701_v54 = vrot.slane %v338_v18, %v373_v36  ;;  %v1703_v55 = vrot.slane %v1285_v19, %v373_v36  ;;  %p1431_p8 = scmp.ne.s32.totalorder %s2156_s11, %s1430_s16 }
  0x33   : > { %v1705_v56 = vrot.slane %v1290_v30, %v361_v27  ;;  %v1707_v57 = vrot.slane %v1291_v35, %v361_v27  ;;  %v1741_v18 = vrot.slane %v1290_v30, %v373_v36  ;;  %v1743_v19 = vrot.slane %v1291_v35, %v373_v36 }
  0x34   : > { %2241 = vst [vmem:[#allocation18_spill] sm:$0xff] %v1701_v54  ;;  %p1432_p9 = pnand %p1431_p8, %p1586_p5 }
  0x35   : > { %2242 = vst [vmem:[#allocation19_spill] sm:$0xff] %v1707_v57  ;;  %2245 = vst [vmem:[#allocation22_spill] sm:$0xff] %v1741_v18 }
  0x36   : > { %1401 = vset.pattern.permute.xlu1 %v1501_v6  ;;  %1400 = vset.pattern.permute.xlu0 %v1501_v6  ;;  %v1733_v6 = vrot.slane %v1288_v24, %v373_v36  ;;  %2246 = vst [vmem:[#allocation23_spill] sm:$0xff] %v1743_v19  ;;  %p1433_p10 = pneg %p1432_p9 }
  0x37   : > { %311 = vperm.xlu1 %1401, %v267_v3   ;;  %307 = vperm.xlu0 %1400, %v266_v2  }
  0x3b   : > { %315 = vperm.xlu1 %1401, %v268_v4   ;;  %319 = vperm.xlu0 %1400, %v269_v5  }
  0x3f   : > { %1402 = vset.pattern.permute.xlu1 %v1502_v7  ;;  %1403 = vset.pattern.permute.xlu0 %v1502_v7  ;;  %v1735_v7 = vrot.slane %v1289_v29, %v373_v36 }
  0x40   : > { %323 = vperm.xlu1 %1402, %v266_v2   ;;  %327 = vperm.xlu0 %1403, %v267_v3  }
  0x44   : > { %331 = vperm.xlu1 %1402, %v268_v4   ;;  %v1729_v4 = vrot.slane %v1286_v20, %v373_v36 }
  0x48   : > { %335 = vperm.xlu1 %1402, %v269_v5   ;;  %v1731_v5 = vrot.slane %v1287_v21, %v373_v36 }
  0xa1   : > { %v1627_v8 = vpop.permute.xlu1 %291  ;;  %v1629_v9 = vpop.permute.xlu0 %272 }
  0xa2   : > { %v343_v58 = vmul.f32 %v1651_v25, %v1629_v9  ;;  %v351_v59 = vmul.f32 %v1653_v26, %v1627_v8  ;;  %v431_v60 = vmul.f32 %v1656_v28, %v1629_v9  ;;  %v439_v61 = vmul.f32 %v1658_v31, %v1627_v8 }
  0xa3   : > { %v510_v2 = vmul.f32 %v1660_v32, %v1629_v9  ;;  %v518_v3 = vmul.f32 %v1662_v33, %v1627_v8  ;;  %v589_v20 = vmul.f32 %v1664_v34, %v1629_v9  ;;  %v597_v21 = vmul.f32 %v1667_v37, %v1627_v8 }
  0xa4   : > { %v355_v27 = vadd.f32 %v351_v59, %v343_v58  ;;  %v443_v10 = vadd.f32 %v439_v61, %v431_v60  ;;  %v668_v13 = vmul.f32 %v1669_v38, %v1629_v9  ;;  %v747_v59 = vmul.f32 %v1673_v40, %v1629_v9 }
  0xa5   : > { %v1631_v11 = vpop.permute.xlu1 %295  ;;  %v1633_v12 = vpop.permute.xlu0 %277  ;;  %v522_v29 = vadd.f32 %v518_v3, %v510_v2  ;;  %v755_v60 = vmul.f32 %v1675_v41, %v1627_v8 }
  0xa6   : > { %v344_v0 = vmul.f32 %v1651_v25, %v1633_v12  ;;  %v352_v1 = vmul.f32 %v1653_v26, %v1631_v11  ;;  %v432_v3 = vmul.f32 %v1656_v28, %v1633_v12 }
  0xa8   : > { %v356_v24 = vadd.f32 %v352_v1, %v344_v0 }
  0xa9   : > { %v1641_v14 = vpop.permute.xlu1 %299  ;;  %v1643_v15 = vpop.permute.xlu0 %282 }
  0xad   : > { %v1647_v22 = vpop.permute.xlu1 %303  ;;  %v1649_v23 = vpop.permute.xlu0 %287 }
  0xae   : > { %2233 = vst [vmem:[#allocation10_spill] sm:$0xff] %v1647_v22  ;;  %2234 = vst [vmem:[#allocation11_spill] sm:$0xff] %v1649_v23  ;;  %v440_v22 = vmul.f32 %v1658_v31, %v1631_v11  ;;  %v601_v23 = vadd.f32 %v597_v21, %v589_v20  ;;  %v590_v31 = vmul.f32 %v1664_v34, %v1633_v12 }
  0xaf   : > { %v669_v20 = vmul.f32 %v1669_v38, %v1633_v12 }
  0xb2   : > { %v1681_v44 = vpop.permute.xlu1 %311  ;;  %v1683_v45 = vpop.permute.xlu0 %307 }
  0xb3   : > { %v363_v16 = vmul.f32 %v1685_v46, %v1683_v45  ;;  %v364_v17 = vmul.f32 %v1685_v46, %v1681_v44  ;;  %v451_v36 = vmul.f32 %v1687_v47, %v1683_v45  ;;  %v530_v58 = vmul.f32 %v1693_v50, %v1683_v45 }
  0xb4   : > { %v511_v46 = vmul.f32 %v1660_v32, %v1633_v12 }
  0xb5   : > { %v367_v61 = vadd.f32 %v363_v16, %v355_v27  ;;  %v368_v1 = vadd.f32 %v364_v17, %v356_v24  ;;  %v455_v57 = vadd.f32 %v451_v36, %v443_v10  ;;  %v534_v28 = vadd.f32 %v530_v58, %v522_v29 }
  0xb6   : > { %v1717_v62 = vpop.permute.xlu1 %315  ;;  %v1719_v63 = vpop.permute.xlu0 %319  ;;  %v531_v10 = vmul.f32 %v1693_v50, %v1681_v44  ;;  %v834_v29 = vmul.f32 %v1679_v43, %v1627_v8  ;;  %v748_v36 = vmul.f32 %v1673_v40, %v1633_v12  ;;  %v756_v58 = vmul.f32 %v1675_v41, %v1631_v11 }
  0xb7   : > { %2243 = vst [vmem:[#allocation20_spill] sm:$0xff] %v1717_v62  ;;  %2244 = vst [vmem:[#allocation21_spill] sm:$0xff] %v1719_v63  ;;  %v676_v63 = vmul.f32 %v1671_v39, %v1627_v8  ;;  %v519_v62 = vmul.f32 %v1662_v33, %v1631_v11  ;;  %v759_v33 = vadd.f32 %v755_v60, %v747_v59 }
  0xb9   : > { %v680_v19 = vadd.f32 %v676_v63, %v668_v13 }
  0xbb   : > { %v1753_v30 = vpop.permute.xlu1 %323  ;;  %v1755_v35 = vpop.permute.xlu0 %327 }
  0xbc   : > { %v375_v0 = vmul.f32 %v1701_v54, %v1753_v30  ;;  %v376_v2 = vmul.f32 %v1701_v54, %v1755_v35  ;;  %v463_v17 = vmul.f32 %v1703_v55, %v1753_v30  ;;  %v542_v24 = vmul.f32 %v1729_v4, %v1753_v30 }
  0xbd   : > { %v452_v54 = vmul.f32 %v1687_v47, %v1681_v44  ;;  %v464_v13 = vmul.f32 %v1703_v55, %v1755_v35  ;;  %v621_v63 = vmul.f32 %v1731_v5, %v1753_v30 }
  0xbe   : > { %v379_v16 = vadd.f32 %v375_v0, %v367_v61  ;;  %v380_v27 = vadd.f32 %v376_v2, %v368_v1  ;;  %v609_v61 = vmul.f32 %v1695_v51, %v1683_v45  ;;  %v444_v0 = vadd.f32 %v440_v22, %v432_v3 }
  0xbf   : > { %v523_v1 = vadd.f32 %v519_v62, %v511_v46  ;;  %v598_v2 = vmul.f32 %v1667_v37, %v1631_v11  ;;  %v467_v18 = vadd.f32 %v463_v17, %v455_v57  ;;  %v546_v47 = vadd.f32 %v542_v24, %v534_v28 }
  0xc0   : > { %383 = vmax.xlane.f32.xlu0 %v379_v16  ;;  %385 = vmax.xlane.f32.xlu1 %v380_v27  ;;  %v677_v22 = vmul.f32 %v1671_v39, %v1631_v11  ;;  %v826_v46 = vmul.f32 %v1677_v42, %v1629_v9  ;;  %v456_v28 = vadd.f32 %v452_v54, %v444_v0 }
  0xc1   : > { %v613_v57 = vadd.f32 %v609_v61, %v601_v23  ;;  %v688_v62 = vmul.f32 %v1697_v52, %v1683_v45  ;;  %v602_v21 = vadd.f32 %v598_v2, %v590_v31  ;;  %v700_v23 = vmul.f32 %v1733_v6, %v1753_v30 }
  0xc2   : > { %v468_v59 = vadd.f32 %v464_v13, %v456_v28  ;;  %v535_v54 = vadd.f32 %v531_v10, %v523_v1  ;;  %v905_v31 = vmul.f32 %v1689_v48, %v1629_v9  ;;  %v913_v3 = vmul.f32 %v1691_v49, %v1627_v8 }
  0xc3   : > { %v625_v60 = vadd.f32 %v621_v63, %v613_v57  ;;  %v692_v16 = vadd.f32 %v688_v62, %v680_v19  ;;  %v610_v27 = vmul.f32 %v1695_v51, %v1681_v44  ;;  %v767_v17 = vmul.f32 %v1699_v53, %v1683_v45 }
  0xc4   : > { %471 = vmax.xlane.f32.xlu0 %v467_v18  ;;  %550 = vmax.xlane.f32.xlu1 %v546_v47  ;;  %v543_v47 = vmul.f32 %v1729_v4, %v1755_v35  ;;  %v681_v18 = vadd.f32 %v677_v22, %v669_v20  ;;  %v838_v24 = vadd.f32 %v834_v29, %v826_v46 }
  0xc5   : > { %v760_v61 = vadd.f32 %v756_v58, %v748_v36  ;;  %v827_v0 = vmul.f32 %v1677_v42, %v1633_v12  ;;  %v835_v9 = vmul.f32 %v1679_v43, %v1631_v11  ;;  %v704_v2 = vadd.f32 %v700_v23, %v692_v16 }
  0xc6   : > { %v547_v1 = vadd.f32 %v543_v47, %v535_v54  ;;  %v622_v8 = vmul.f32 %v1731_v5, %v1755_v35  ;;  %v779_v19 = vmul.f32 %v1735_v7, %v1753_v30  ;;  %v689_v13 = vmul.f32 %v1697_v52, %v1681_v44 }
  0xc7   : > { %v917_v63 = vadd.f32 %v913_v3, %v905_v31  ;;  %v345_v10 = vmul.f32 %v1651_v25, %v1643_v15  ;;  %v353_v20 = vmul.f32 %v1653_v26, %v1641_v14  ;;  %v614_v22 = vadd.f32 %v610_v27, %v602_v21  ;;  %v2250_v27 = vld [vmem:[#allocation19_spill] sm:$0xff] }
  0xc8   : > { %473 = vmax.xlane.f32.xlu0 %v468_v59  ;;  %629 = vmax.xlane.f32.xlu1 %v625_v60  ;;  %v771_v46 = vadd.f32 %v767_v17, %v759_v33  ;;  %v846_v28 = vmul.f32 %v1705_v56, %v1683_v45  ;;  %v839_v57 = vadd.f32 %v835_v9, %v827_v0  ;;  %v2247_v33 = vld [vmem:[#allocation22_spill] sm:$0xff] }
  0xc9   : > { %v906_v62 = vmul.f32 %v1689_v48, %v1633_v12  ;;  %v914_v29 = vmul.f32 %v1691_v49, %v1631_v11  ;;  %v512_v36 = vmul.f32 %v1660_v32, %v1643_v15  ;;  %v626_v58 = vadd.f32 %v622_v8, %v614_v22  ;;  %v2248_v12 = vld [vmem:[#allocation14_spill] sm:$0xff]  ;;  %v2249_v11 = vld [vmem:[#allocation12_spill] sm:$0xff] }
  0xca   : > { %v783_v59 = vadd.f32 %v779_v19, %v771_v46  ;;  %v701_v60 = vmul.f32 %v1733_v6, %v1755_v35  ;;  %v858_v21 = vmul.f32 %v2247_v33, %v1753_v30  ;;  %v768_v47 = vmul.f32 %v1699_v53, %v1681_v44  ;;  %v1861_v19 = vpop.permute.xlu1 %331  ;;  %v2254_v46 = vld [vmem:[#allocation20_spill] sm:$0xff] }
  0xcb   : > { %v357_v23 = vadd.f32 %v353_v20, %v345_v10  ;;  %v520_v54 = vmul.f32 %v2248_v12, %v1641_v14  ;;  %v433_v31 = vmul.f32 %v2249_v11, %v1643_v15  ;;  %v693_v3 = vadd.f32 %v689_v13, %v681_v18  ;;  %v2252_v18 = vld [vmem:[#allocation23_spill] sm:$0xff] }
  0xcc   : > { %552 = vmax.xlane.f32.xlu0 %v547_v1  ;;  %708 = vmax.xlane.f32.xlu1 %v704_v2  ;;  %v850_v16 = vadd.f32 %v846_v28, %v838_v24  ;;  %v925_v17 = vmul.f32 %v2250_v27, %v1683_v45  ;;  %v780_v0 = vmul.f32 %v1735_v7, %v1755_v35  ;;  %v2251_v1 = vld [vmem:[#allocation13_spill] sm:$0xff]  ;;  %v2253_v13 = vld [vmem:[#allocation11_spill] sm:$0xff]  ;;  %v2255_v28 = vld [vmem:[#allocation16_spill] sm:$0xff] }
  0xcd   : > { %v918_v9 = vadd.f32 %v914_v29, %v906_v62  ;;  %v441_v2 = vmul.f32 %v2251_v1, %v1641_v14  ;;  %v670_v8 = vmul.f32 %v1669_v38, %v1643_v15  ;;  %v705_v10 = vadd.f32 %v701_v60, %v693_v3 }
  0xce   : > { %v862_v20 = vadd.f32 %v858_v21, %v850_v16  ;;  %v937_v24 = vmul.f32 %v2252_v18, %v1753_v30  ;;  %v592_v45 = vmul.f32 %v1664_v34, %v2253_v13  ;;  %v847_v22 = vmul.f32 %v1705_v56, %v1681_v44  ;;  %v2257_v16 = vld [vmem:[#allocation18_spill] sm:$0xff] }
  0xcf   : > { %v365_v62 = vmul.f32 %v2255_v28, %v2254_v46  ;;  %v524_v29 = vadd.f32 %v520_v54, %v512_v36  ;;  %v772_v60 = vadd.f32 %v768_v47, %v760_v61  ;;  %v929_v21 = vadd.f32 %v925_v17, %v917_v63 }
  0xd0   : > { %631 = vmax.xlane.f32.xlu0 %v626_v58  ;;  %787 = vmax.xlane.f32.xlu1 %v783_v59  ;;  %v2256_v58 = vld [vmem:[#allocation10_spill] sm:$0xff]  ;;  %v829_v30 = vmul.f32 %v1677_v42, %v2253_v13  ;;  %v859_v3 = vmul.f32 %v2247_v33, %v1755_v35  ;;  %v377_v38 = vmul.f32 %v2257_v16, %v1861_v19 }
  0xd1   : > { %v600_v59 = vmul.f32 %v1667_v37, %v2256_v58  ;;  %v837_v36 = vmul.f32 %v1679_v43, %v2256_v58  ;;  %v784_v54 = vadd.f32 %v780_v0, %v772_v60  ;;  %v941_v11 = vadd.f32 %v937_v24, %v929_v21 }
  0xd2   : > { %v750_v61 = vmul.f32 %v1673_v40, %v2253_v13  ;;  %v758_v63 = vmul.f32 %v1675_v41, %v2256_v58  ;;  %v851_v47 = vadd.f32 %v847_v22, %v839_v57  ;;  %v369_v17 = vadd.f32 %v365_v62, %v357_v23  ;;  %v2259_v23 = vld [vmem:[#allocation21_spill] sm:$0xff] }
  0xd3   : > { %v1879_v1 = vadd.f32 %v600_v59, %v592_v45  ;;  %v532_v45 = vmul.f32 %v1693_v50, %v2254_v46  ;;  %v908_v24 = vmul.f32 %v1689_v48, %v2253_v13  ;;  %v678_v59 = vmul.f32 %v1671_v39, %v1641_v14 }
  0xd4   : > { %710 = vmax.xlane.f32.xlu0 %v705_v10  ;;  %866 = vmax.xlane.f32.xlu1 %v862_v20  ;;  %v926_v10 = vmul.f32 %v2250_v27, %v1681_v44  ;;  %v1889_v20 = vadd.f32 %v837_v36, %v829_v30  ;;  %v1893_v0 = vadd.f32 %v758_v63, %v750_v61  ;;  %v2260_v36 = vld [vmem:[#allocation17_spill] sm:$0xff] }
  0xd5   : > { %v591_v57 = vmul.f32 %v1664_v34, %v1643_v15  ;;  %v916_v44 = vmul.f32 %v1691_v49, %v2256_v58  ;;  %v863_v22 = vadd.f32 %v859_v3, %v851_v47  ;;  %v381_v62 = vadd.f32 %v377_v38, %v369_v17 }
  0xd6   : > { %2258 = vst [vmem:[#allocation22_spill] sm:$0xff] %v1893_v0  ;;  %v938_v60 = vmul.f32 %v2252_v18, %v1755_v35  ;;  %v544_v21 = vmul.f32 %v1729_v4, %v1861_v19  ;;  %v445_v30 = vadd.f32 %v441_v2, %v433_v31  ;;  %v599_v34 = vmul.f32 %v1667_v37, %v1641_v14 }
  0xd7   : > { %v920_v61 = vadd.f32 %v916_v44, %v908_v24  ;;  %v930_v63 = vadd.f32 %v926_v10, %v918_v9  ;;  %v536_v0 = vadd.f32 %v532_v45, %v524_v29  ;;  %v690_v38 = vmul.f32 %v1697_v52, %v2254_v46 }
  0xd8   : > { %789 = vmax.xlane.f32.xlu0 %v784_v54  ;;  %945 = vmax.xlane.f32.xlu1 %v941_v11  ;;  %v928_v11 = vmul.f32 %v2250_v27, %v2259_v23  ;;  %v453_v54 = vmul.f32 %v2260_v36, %v2254_v46  ;;  %v682_v3 = vadd.f32 %v678_v59, %v670_v8 }
  0xd9   : > { %v828_v35 = vmul.f32 %v1677_v42, %v1643_v15  ;;  %v836_v31 = vmul.f32 %v1679_v43, %v1641_v14  ;;  %v942_v47 = vadd.f32 %v938_v60, %v930_v63  ;;  %v548_v17 = vadd.f32 %v544_v21, %v536_v0 }
  0xda   : > { %v1919_v2 = vadd.f32 %v928_v11, %v920_v61  ;;  %v465_v37 = vmul.f32 %v1703_v55, %v1861_v19  ;;  %v702_v9 = vmul.f32 %v1733_v6, %v1861_v19  ;;  %v611_v29 = vmul.f32 %v1695_v51, %v2254_v46 }
  0xdb   : > { %v848_v8 = vmul.f32 %v1705_v56, %v2254_v46  ;;  %v749_v42 = vmul.f32 %v1673_v40, %v1643_v15  ;;  %v757_v43 = vmul.f32 %v1675_v41, %v1641_v14  ;;  %v457_v10 = vadd.f32 %v453_v54, %v445_v30 }
  0xdc   : > { %868 = vmax.xlane.f32.xlu0 %v863_v22  ;;  %387 = vmax.xlane.f32.xlu1 %v381_v62  ;;  %v694_v45 = vadd.f32 %v690_v38, %v682_v3  ;;  %v603_v0 = vadd.f32 %v599_v34, %v591_v57  ;;  %v623_v24 = vmul.f32 %v1731_v5, %v1861_v19  ;;  %v1939_v22 = vpop.permute.xlu1 %335 }
  0xdd   : > { %v840_v59 = vadd.f32 %v836_v31, %v828_v35  ;;  %v769_v44 = vmul.f32 %v1699_v53, %v2254_v46  ;;  %v346_v11 = vmul.f32 %v1651_v25, %v2253_v13  ;;  %v469_v40 = vadd.f32 %v465_v37, %v457_v10  ;;  %v2262_v37 = vld [vmem:[#allocation13_spill] sm:$0xff] }
  0xde   : > { %v706_v62 = vadd.f32 %v702_v9, %v694_v45  ;;  %v860_v41 = vmul.f32 %v2247_v33, %v1861_v19  ;;  %v354_v57 = vmul.f32 %v1653_v26, %v2256_v58  ;;  %v615_v60 = vadd.f32 %v611_v29, %v603_v0  ;;  %v2263_v29 = vld [vmem:[#allocation15_spill] sm:$0xff] }
  0xdf   : > { %v852_v21 = vadd.f32 %v848_v8, %v840_v59  ;;  %v761_v30 = vadd.f32 %v757_v43, %v749_v42  ;;  %v781_v54 = vmul.f32 %v1735_v7, %v1861_v19  ;;  %v366_v25 = vmul.f32 %v2255_v28, %v2259_v23 }
  0xe0   : > { %947 = vmax.xlane.f32.xlu0 %v942_v47  ;;  %554 = vmax.xlane.f32.xlu1 %v548_v17  ;;  %v907_v34 = vmul.f32 %v1689_v48, %v1643_v15  ;;  %v915_v61 = vmul.f32 %v1691_v49, %v1641_v14  ;;  %v627_v63 = vadd.f32 %v623_v24, %v615_v60  ;;  %v2261_v17 = vld [vmem:[#allocation12_spill] sm:$0xff] }
  0xe1   : > { %v773_v38 = vadd.f32 %v769_v44, %v761_v30  ;;  %v378_v26 = vmul.f32 %v2257_v16, %v1939_v22  ;;  %v864_v3 = vadd.f32 %v860_v41, %v852_v21  ;;  %v358_v35 = vadd.f32 %v354_v57, %v346_v11 }
  0xe2   : > { %v513_v31 = vmul.f32 %v1660_v32, %v2253_v13  ;;  %v521_v47 = vmul.f32 %v2248_v12, %v2256_v58  ;;  %v927_v15 = vmul.f32 %v2250_v27, %v2254_v46  ;;  %v919_v48 = vadd.f32 %v915_v61, %v907_v34 }
  0xe3   : > { %v785_v28 = vadd.f32 %v781_v54, %v773_v38  ;;  %v370_v14 = vadd.f32 %v366_v25, %v358_v35  ;;  %v533_v49 = vmul.f32 %v1693_v50, %v2259_v23  ;;  %v939_v16 = vmul.f32 %v2252_v18, %v1861_v19 }
  0xe4   : > { %475 = vmax.xlane.f32.xlu0 %v469_v40  ;;  %712 = vmax.xlane.f32.xlu1 %v706_v62  ;;  %v545_v32 = vmul.f32 %v1729_v4, %v1939_v22  ;;  %v434_v12 = vmul.f32 %v2261_v17, %v2253_v13  ;;  %v442_v9 = vmul.f32 %v2262_v37, %v2256_v58  ;;  %v1503_v30 = vmov 0.0  }
  0xe5   : > { %v382_v27 = vadd.f32 %v378_v26, %v370_v14  ;;  %v525_v46 = vadd.f32 %v521_v47, %v513_v31  ;;  %v671_v8 = vmul.f32 %v2263_v29, %v2253_v13  ;;  %v679_v50 = vmul.f32 %v1671_v39, %v2256_v58  ;;  %1311 = vmatprep.subr.mxu0 %v1503_v30 }
  0xe6   : > { %v454_v19 = vmul.f32 %v2260_v36, %v2259_v23  ;;  %v931_v4 = vadd.f32 %v927_v15, %v919_v48  ;;  %v691_v43 = vmul.f32 %v1697_v52, %v2259_v23  ;;  %v446_v10 = vadd.f32 %v442_v9, %v434_v12  ;;  %1319 = vmatprep.mubr.msk.f32.mxu0 %vm1504_vm0, %v1503_v30 }
  0xe7   : > { %v537_v42 = vadd.f32 %v533_v49, %v525_v46  ;;  %v466_v45 = vmul.f32 %v1703_v55, %v1939_v22  ;;  %v683_v13 = vadd.f32 %v679_v50, %v671_v8  ;;  %v703_v39 = vmul.f32 %v1733_v6, %v1939_v22  ;;  %1322 = vmatprep.subr.mxu1 %v1503_v30 }
  0xe8   : > { %633 = vmax.xlane.f32.xlu0 %v627_v63  ;;  %870 = vmax.xlane.f32.xlu1 %v864_v3  ;;  %v943_v0 = vadd.f32 %v939_v16, %v931_v4  ;;  %v458_v58 = vadd.f32 %v454_v19, %v446_v10  ;;  %v612_v59 = vmul.f32 %v1695_v51, %v2259_v23  ;;  %v2265_v48 = vlaneseq }
  0xe9   : > { %v549_v24 = vadd.f32 %v545_v32, %v537_v42  ;;  %v695_v36 = vadd.f32 %v691_v43, %v683_v13  ;;  %v849_v52 = vmul.f32 %v1705_v56, %v2259_v23  ;;  %v624_v55 = vmul.f32 %v1731_v5, %v1939_v22  ;;  %v2264_v5 = vld [vmem:[#allocation22_spill] sm:$0xff]  ;;  %1330 = vmatprep.mubr.msk.f32.mxu1 %vm1504_vm0, %v1503_v30 }
  0xea   : > { %v470_v44 = vadd.f32 %v466_v45, %v458_v58  ;;  %v861_v40 = vmul.f32 %v2247_v33, %v1939_v22  ;;  %v616_v6 = vadd.f32 %v612_v59, %v1879_v1  ;;  %v770_v51 = vmul.f32 %v1699_v53, %v2259_v23  ;;  %v988_v53 = vld [vmem:[#allocation3 + $0x10] sm:$0xff] }
  0xeb   : > { %v707_v11 = vadd.f32 %v703_v39, %v695_v36  ;;  %v853_v62 = vadd.f32 %v849_v52, %v1889_v20  ;;  %v782_v56 = vmul.f32 %v1735_v7, %v1939_v22  ;;  %v940_v33 = vmul.f32 %v2252_v18, %v1939_v22  ;;  %v989_v20 = vld [vmem:[#allocation3 + $0x18] sm:$0xff]  ;;  %v987_v7 = vld [vmem:[#allocation3 + $0x8] sm:$0xff]  ;;  %v986_v18 = vld [vmem:[#allocation3] sm:$0xff] }
  0xec   : > { %791 = vmax.xlane.f32.xlu0 %v785_v28  ;;  %389 = vmax.xlane.f32.xlu1 %v382_v27  ;;  %v628_v41 = vadd.f32 %v624_v55, %v616_v6  ;;  %v774_v60 = vadd.f32 %v770_v51, %v2264_v5  ;;  %v1073_v23 = vld [vmem:[%s2203_s4 + $0x18] sm:$0xff]  ;;  %v396_v49 = vand.u32 127, %v2265_v48  ;;  %v2266_v27 = vld [vmem:[#allocation9_spill] sm:$0xff] }
  0xed   : > { %v865_v57 = vadd.f32 %v861_v40, %v853_v62  ;;  %v944_v1 = vadd.f32 %v940_v33, %v1919_v2  ;;  %1312 = vmatpush3.msra.mxu0 %v989_v20  ;;  %1323 = vmatpush3.msra.mxu1 %v1073_v23 }
  0xee   : > { %v786_v21 = vadd.f32 %v782_v56, %v774_v60  ;;  %1313 = vmatprep.subr.mxu0 %v1503_v30  ;;  %1324 = vmatprep.subr.mxu1 %v1503_v30  ;;  %v401_v17 = vadd.s32 4294967288, %v396_v49  ;;  %v408_v12 = vadd.s32 4294967280, %v396_v49  ;;  %v2033_v29 = vsub.s32 %v396_v49, %v2266_v27 }
  0xef   : > { %1314 = vmatpush3.msra.mxu0 %v988_v53  ;;  %v415_v8 = vadd.s32 4294967272, %v396_v49 }
  0xf0   : > { %949 = vmax.xlane.f32.xlu0 %v943_v0  ;;  %556 = vmax.xlane.f32.xlu1 %v549_v24  ;;  %v2030_v46 = vsub.s32 %v401_v17, %v2266_v27  ;;  %v2036_v50 = vsub.s32 %v408_v12, %v2266_v27 }
  0xf1   : > { %1315 = vmatprep.subr.mxu0 %v1503_v30  ;;  %v2041_v10 = vsub.s32 %v415_v8, %v2266_v27 }
  0xf2   : > { %1316 = vmatpush3.msra.mxu0 %v987_v7 }
  0xf3   : > { %1317 = vmatprep.subr.mxu0 %v1503_v30 }
  0xf4   : > { %477 = vmax.xlane.f32.xlu0 %v470_v44  ;;  %714 = vmax.xlane.f32.xlu1 %v707_v11 }
  0xf5   : > { %1318 = vmatpush3.msra.mxu0 %v986_v18 }
  0xf8   : > { %635 = vmax.xlane.f32.xlu0 %v628_v41  ;;  %872 = vmax.xlane.f32.xlu1 %v865_v57 }
  0xfc   : > { %793 = vmax.xlane.f32.xlu0 %v786_v21 }
 0x100   : > { %951 = vmax.xlane.f32.xlu0 %v944_v1 }
 0x149   : > { %v386_v2 = vpop.xlane.xlu1 %385  ;;  %v384_v22 = vpop.xlane.xlu0 %383 }
 0x14a   : > { %v405_v42 = vrot.slane %v386_v2, %v2030_v46  ;;  %v400_v43 = vrot.slane %v384_v22, %v2033_v29 }
 0x14c   : > { %v407_v13 = vsel %vm406_vm1, %v405_v42, %v400_v43 }
 0x14d   : > { %v551_v54 = vpop.xlane.xlu1 %550  ;;  %v472_v25 = vpop.xlane.xlu0 %471 }
 0x14e   : > { %v565_v52 = vrot.slane %v551_v54, %v2033_v29  ;;  %v486_v41 = vrot.slane %v472_v25, %v2033_v29 }
 0x151   : > { %v2012_v34 = vpop.xlane.xlu1 %629  ;;  %v474_v61 = vpop.xlane.xlu0 %473 }
 0x152   : > { %v490_v11 = vrot.slane %v474_v61, %v2030_v46  ;;  %v644_v33 = vrot.slane %v2012_v34, %v2033_v29 }
 0x154   : > { %v491_v1 = vsel %vm406_vm1, %v490_v11, %v486_v41 }
 0x155   : > { %v709_v63 = vpop.xlane.xlu1 %708  ;;  %v553_v38 = vpop.xlane.xlu0 %552 }
 0x156   : > { %v569_v39 = vrot.slane %v553_v38, %v2030_v46  ;;  %v723_v60 = vrot.slane %v709_v63, %v2033_v29 }
 0x158   : > { %v570_v6 = vsel %vm406_vm1, %v569_v39, %v565_v52  ;;  %v1293_v52 = vld [vmem:[%s2201_s2 + $0x1] ss:$0 sm:$0xff] }
 0x159   : > { %v2014_v26 = vpop.xlane.xlu1 %787  ;;  %v2016_v3 = vpop.xlane.xlu0 %631 }
 0x15a   : > { %v648_v20 = vrot.slane %v2016_v3, %v2030_v46 }
 0x15d   : > { %v2018_v35 = vpop.xlane.xlu1 %866  ;;  %v711_v31 = vpop.xlane.xlu0 %710 }
 0x15e   : > { %v727_v62 = vrot.slane %v711_v31, %v2030_v46  ;;  %v881_v63 = vrot.slane %v2018_v35, %v2033_v29  ;;  %v649_v31 = vsel %vm406_vm1, %v648_v20, %v644_v33 }
 0x160   : > { %v728_v18 = vsel %vm406_vm1, %v727_v62, %v723_v60 }
 0x161   : > { %v2020_v47 = vpop.xlane.xlu1 %945  ;;  %v2022_v28 = vpop.xlane.xlu0 %789 }
 0x162   : > { %v806_v48 = vrot.slane %v2022_v28, %v2030_v46 }
 0x165   : > { %v388_v15 = vpop.xlane.xlu1 %387  ;;  %v2024_v14 = vpop.xlane.xlu0 %868 }
 0x166   : > { %v412_v45 = vrot.slane %v388_v15, %v2036_v50  ;;  %v885_v23 = vrot.slane %v2024_v14, %v2030_v46 }
 0x168   : > { %v414_v36 = vsel %vm413_vm2, %v412_v45, %v407_v13  ;;  %v886_v49 = vsel %vm406_vm1, %v885_v23, %v881_v63  ;;  %v960_v45 = vrot.slane %v2020_v47, %v2033_v29 }
 0x169   : > { %v555_v16 = vpop.xlane.xlu1 %554  ;;  %v2027_v32 = vpop.xlane.xlu0 %947 }
 0x16a   : > { %v574_v59 = vrot.slane %v555_v16, %v2036_v50 }
 0x16c   : > { %v575_v57 = vsel %vm413_vm2, %v574_v59, %v570_v6  ;;  %v1070_v59 = vld [vmem:[%s2203_s4] sm:$0xff] }
 0x16d   : > { %v713_v37 = vpop.xlane.xlu1 %712  ;;  %v476_v9 = vpop.xlane.xlu0 %475  ;;  %v1295_v6 = vld [vmem:[%s2204_s5] ss:$0 sm:$0xff] }
 0x16e   : > { %v732_v56 = vrot.slane %v713_v37, %v2036_v50  ;;  %v495_v5 = vrot.slane %v476_v9, %v2036_v50  ;;  %v802_v9 = vrot.slane %v2014_v26, %v2033_v29 }
 0x170   : > { %v733_v54 = vsel %vm413_vm2, %v732_v56, %v728_v18  ;;  %v496_v25 = vsel %vm413_vm2, %v495_v5, %v491_v1 }
 0x171   : > { %v871_v19 = vpop.xlane.xlu1 %870  ;;  %v634_v4 = vpop.xlane.xlu0 %633 }
 0x172   : > { %v890_v34 = vrot.slane %v871_v19, %v2036_v50  ;;  %v653_v61 = vrot.slane %v634_v4, %v2036_v50  ;;  %v807_v19 = vsel %vm406_vm1, %v806_v48, %v802_v9  ;;  %v964_v4 = vrot.slane %v2027_v32, %v2030_v46 }
 0x174   : > { %v891_v17 = vsel %vm413_vm2, %v890_v34, %v886_v49  ;;  %v654_v12 = vsel %vm413_vm2, %v653_v61, %v649_v31  ;;  %v965_v13 = vsel %vm406_vm1, %v964_v4, %v960_v45 }
 0x175   : > { %v390_v0 = vpop.xlane.xlu1 %389  ;;  %v792_v24 = vpop.xlane.xlu0 %791 }
 0x176   : > { %v419_v58 = vrot.slane %v390_v0, %v2041_v10  ;;  %v811_v37 = vrot.slane %v792_v24, %v2036_v50 }
 0x178   : > { %v421_v44 = vsel %vm420_vm3, %v419_v58, %v414_v36  ;;  %v812_v43 = vsel %vm413_vm2, %v811_v37, %v807_v19  ;;  %v1071_v36 = vld [vmem:[%s2203_s4 + $0x8] sm:$0xff] }
 0x179   : > { %424 = vst.msk [vmem:[#allocation2] sm:$0x1] %vm423_vm4, %v421_v44  ;;  %v557_v55 = vpop.xlane.xlu1 %556  ;;  %v950_v40 = vpop.xlane.xlu0 %949 }
 0x17a   : > { %v579_v51 = vrot.slane %v557_v55, %v2041_v10  ;;  %v969_v26 = vrot.slane %v950_v40, %v2036_v50  ;;  %v1292_v50 = vld [vmem:[%s2201_s2] ss:$0 sm:$0xff] }
 0x17c   : > { %v580_v21 = vsel %vm420_vm3, %v579_v51, %v575_v57  ;;  %v970_v32 = vsel %vm413_vm2, %v969_v26, %v965_v13 }
 0x17d   : > { %582 = vst.msk [vmem:[#allocation2 + $0x2] sm:$0x1] %vm423_vm4, %v580_v21  ;;  %v715_v53 = vpop.xlane.xlu1 %714  ;;  %v478_v7 = vpop.xlane.xlu0 %477 }
 0x17e   : > { %v737_v2 = vrot.slane %v715_v53, %v2041_v10  ;;  %v500_v22 = vrot.slane %v478_v7, %v2041_v10 }
 0x180   : > { %v738_v38 = vsel %vm420_vm3, %v737_v2, %v733_v54  ;;  %v501_v3 = vsel %vm420_vm3, %v500_v22, %v496_v25 }
 0x181   : > { %740 = vst.msk [vmem:[#allocation2 + $0x4] sm:$0x1] %vm423_vm4, %v738_v38  ;;  %503 = vst.msk [vmem:[#allocation2 + $0x1] sm:$0x1] %vm423_vm4, %v501_v3  ;;  %v873_v15 = vpop.xlane.xlu1 %872  ;;  %v636_v14 = vpop.xlane.xlu0 %635 }
 0x182   : > { %v895_v16 = vrot.slane %v873_v15, %v2041_v10  ;;  %v658_v35 = vrot.slane %v636_v14, %v2041_v10 }
 0x184   : > { %v896_v27 = vsel %vm420_vm3, %v895_v16, %v891_v17  ;;  %v659_v8 = vsel %vm420_vm3, %v658_v35, %v654_v12 }
 0x185   : > { %898 = vst.msk [vmem:[#allocation2 + $0x6] sm:$0x1] %vm423_vm4, %v896_v27  ;;  %661 = vst.msk [vmem:[#allocation2 + $0x3] sm:$0x1] %vm423_vm4, %v659_v8  ;;  %v794_v28 = vpop.xlane.xlu0 %793 }
 0x186   : > { %v816_v42 = vrot.slane %v794_v28, %v2041_v10 }
 0x188   : > { %v817_v0 = vsel %vm420_vm3, %v816_v42, %v812_v43 }
 0x189   : > { %819 = vst.msk [vmem:[#allocation2 + $0x5] sm:$0x1] %vm423_vm4, %v817_v0  ;;  %v952_v24 = vpop.xlane.xlu0 %951 }
 0x18a   : > { %v974_v39 = vrot.slane %v952_v24, %v2041_v10  ;;  %v1072_v10 = vld [vmem:[%s2203_s4 + $0x10] sm:$0xff] }
 0x18b   : > { %1325 = vmatpush3.msra.mxu1 %v1072_v10 }
 0x18c   : > { %v975_v46 = vsel %vm420_vm3, %v974_v39, %v970_v32  ;;  %1326 = vmatprep.subr.mxu1 %v1503_v30 }
 0x18d   : > { %977 = vst.msk [vmem:[#allocation2 + $0x7] sm:$0x1] %vm423_vm4, %v975_v46  ;;  %1327 = vmatpush3.msra.mxu1 %v1071_v36 }
 0x18e   : > { %1328 = vmatprep.subr.mxu1 %v1503_v30  ;;  %v1297_v30 = vld [vmem:[%s2204_s5 + $0x1] ss:$0 sm:$0xff] }
 0x18f   : > { %1329 = vmatpush3.msra.mxu1 %v1070_v59 }
 0x194   : > { %v978_v47 = vld [vmem:[#allocation2] sm:$0xff] }
 0x195   : > { %v984_v29 = vadd.f32 %v1292_v50, %v978_v47 }
 0x197   : > { %v985_v58 = vmax.f32 %v984_v29, 0.0 }
 0x199   : > { %1320 = vmatmul.mubr.msk.f32.vlgmr.msra.gmra.mxu0 %vm995_vm5, %v985_v58 }
 0x259   : > { %v1065_v44 = vpop.f32.mrf.mxu0 }
 0x25a   : > { %v1066_v11 = vadd.f32 %v1293_v52, %v1065_v44 }
 0x25b   : > { %v1321_v55 = vpop.f32.mrf.mxu0 }
 0x25c   : > { %v1069_v40 = vmax.f32 %v1066_v11, 0.0 }
 0x25e   : > { %1331 = vmatmul.mubr.msk.f32.vlgmr.msra.gmra.mxu1 %vm995_vm5, %v1069_v40 }
 0x31e   : > { %v1148_v62 = vpop.f32.mrf.mxu1 }
 0x31f   : > { %v1149_v51 = vadd.f32 %v1295_v6, %v1148_v62 }
 0x320   : > { %v1332_v41 = vpop.f32.mrf.mxu1 }
 0x321   : > { %v1152_v57 = vmax.f32 %v1149_v51, 0.0 }
 0x323   : > { %v1158_v56 = vadd.f32 %v1297_v30, %v1152_v57 }
 0x325   : > { %1167 = vrot.lane.b32.xlu0 %v1158_v56, %s1505_s17  ;;  %1162 = vrot.lane.b32.xlu1 %v1158_v56, %s1506_s18  ;;  %1160 = vst.msk [vmem:[%s2141_s19] sm:$0x1] %vm1159_vm6, %v1158_v56  ;;  %s1512_s17 = smov [#allocation6]  }
 0x326   : > { %s1434_s18 = sshll.u32 %s1512_s17, 4  ;;  %s1435_s18 = int_to_ptr.vmem [resolvable:$false] %s1434_s18 }
 0x327   : > { %p1437_p11 = scmp.lt.s32.totalorder %s2156_s11, %s1435_s18 }
 0x329   : > { %1182 = vrot.lane.b32.xlu0 %v1158_v56, %s1507_s20  ;;  %1172 = vrot.lane.b32.xlu1 %v1158_v56, %s1508_s26  ;;  %s1436_s20 = scalar_lea.vmem %s1435_s18, 32 }
 0x32a   : > { %p1438_p12 = scmp.lt.s32.totalorder %s1436_s20, %s1430_s16 }
 0x32c   : > { %p1439_p13 = por %p1438_p12, %p1437_p11 }
 0x32d   : > { %1192 = vrot.lane.b32.xlu0 %v1158_v56, %s1509_s28  ;;  %1177 = vrot.lane.b32.xlu1 %v1158_v56, %s1510_s29 }
 0x32e   : > { %p1440_p0 = pnand %p1439_p13, %p1433_p10 }
 0x331   : > { %1187 = vrot.lane.b32.xlu1 %v1158_v56, %s1511_s9 }
 0x397   : > { %v1168_v5 = vpop.permute.xlu0 %1167  ;;  %v1163_v60 = vpop.permute.xlu1 %1162 }
 0x398   : > { %1166 = vst.msk [vmem:[%s2141_s19 - $0x1] sm:$0x2] %vm1165_vm7, %v1163_v60 }
 0x399   : > { %1171 = vst.msk [vmem:[%s2141_s19 - $0x2] sm:$0x4] %vm1170_vm8, %v1168_v5 }
 0x39b   : > { %v1173_v21 = vpop.permute.xlu1 %1172  ;;  %v1183_v33 = vpop.permute.xlu0 %1182 }
 0x39c   : > { %1176 = vst.msk [vmem:[%s2141_s19 - $0x3] sm:$0x8] %vm1175_vm9, %v1173_v21 }
 0x39f   : > { %v1178_v1 = vpop.permute.xlu1 %1177  ;;  %v1193_v53 = vpop.permute.xlu0 %1192 }
 0x3a0   : > { %1181 = vst.msk [vmem:[%s2141_s19 - $0x4] sm:$0x10] %vm1180_vm10, %v1178_v1 }
 0x3a1   : > { %1186 = vst.msk [vmem:[%s2141_s19 - $0x5] sm:$0x20] %vm1185_vm11, %v1183_v33 }
 0x3a3   : > { %v1188_v20 = vpop.permute.xlu1 %1187 }
 0x3a4   : > { %1191 = vst.msk [vmem:[%s2141_s19 - $0x6] sm:$0x40] %vm1190_vm12, %v1188_v20 }
 0x3a5   : > { %1196 = vst.msk [vmem:[%s2141_s19 - $0x7] sm:$0x80] %vm1195_vm13, %v1193_v53 }
 0x3a6   : > { %1443 = shalt.err (!%p1440_p0)
}
 0x3a7   : > { %s1444_s19 = scalar_lea.hbm %s2154_s15, 16  ;;  %s1448_s28 = scalar_lea.hbm %s2205_s6, 32 }
 0x3a8   : > { %p1445_p1 = scmp.ne.s32.totalorder %s2154_s15, %s1444_s19  ;;  %p1449_p4 = scmp.lt.s32.totalorder %s2154_s15, %s2205_s6 }
 0x3a9   : > { %p1450_p7 = scmp.lt.s32.totalorder %s1448_s28, %s1444_s19 }
 0x3aa   : > { %p1446_p2 = pnand %p1445_p1, %p1586_p5 }
 0x3ab   : > { %p1451_p6 = por %p1450_p7, %p1449_p4 }
 0x3ac   : > { %p1447_p3 = pneg %p1446_p2 }
 0x3ae   : > { %p1452_p8 = pnand %p1451_p6, %p1447_p3 }
 0x3b0   : > { %1455 = shalt.err (!%p1452_p8)
}
 0x3b1   : > { %1337 = dma.vmem_to_hbm [thread:$0]  (%p1586_p5), %s2156_s11, 16, %s2154_s15, %s1198_s25  }
 0x3b2 PF: > { %p1349_p9 = scmp.ge.s32.totalorder %s1494_s24, 2  ;;  %s1222_s10 = sand.u32 1, %s1482_s21  }
 0x3b3   : > { %p2267_p10 = scmp.ne.s32.totalorder %s2230_s8, 0  ;;  %s1223_s12 = scalar_lea.sflag [#allocation5], %s1222_s10 }
 0x3b5   : > { %p1344_p11 = pnand %p1349_p9, %p2267_p10 }
 0x3b7   : > { %p1345_p12 = pneg %p1344_p11 }
 0x3b9   : > { %1477 = dma.done.wait (%p1345_p12), %s1223_s12, 16  }
 0x3ba   : > { %1479 = vsyncadd (%p1345_p12), %s1223_s12, 4294967280  ;;  %p17_p13 = scmp.ge.s32.totalorder %s1573_s27, 4   ;;  %s2268_s21 = smov %s1486_s22 }
 0x3bb   : > { %s2269_s22 = smov %s1490_s23  ;;  %s2270_s23 = smov %s1584_s30 }
 0x3bc   : > { %s2271_s24 = smov %s1573_s27  ;;  %19 = sbr.rel (!%p17_p13) target bundleno = 4 (0x4), region = 91 }
 0x3c1   :  { %1227 = vsyncpa [#allocation4], 1 }
 0x3c2   :  { %1229 = vsyncpa [#allocation4 + $0x1], 1 }
 0x3c3   :  { %1230 = vsyncpa [#allocation5], 1 }
 0x3c4   :  { %1232 = vsyncpa [#allocation5 + $0x1], 1 }

</bundles_post_ra>
